<compile_context>
chip_gen: v7x
topology: tpu7x:2x2x1
jax: 0.10.0
libtpu: 0.0.40
codegen_flags: <defaults>
</compile_context>

<pallas_src>
import functools

import jax
import jax.numpy as jnp
from jax.experimental import pallas as pl
from jax.experimental.pallas import tpu as pltpu

OBS_HID = 400
OUT_HID = 300


def _round_up(n, m):
    return ((n + m - 1) // m) * m


def _critic_kernel(x_ref, a_ref, w1_ref, b1_ref, w2h_ref, w2a_ref, b2_ref,
                   w3_ref, b3_ref, o_ref, *, act_size):
    # MXU operand dtype is whatever the weights were handed to us in
    # (bf16 fast path or f32 exact path); accumulation is always f32.
    mm_dtype = w1_ref.dtype

    # ---- layer 1: obs_net = Linear(obs, 400) + ReLU  (MXU + VPU) ----
    h1 = jnp.dot(x_ref[...].astype(mm_dtype), w1_ref[...],
                 preferred_element_type=jnp.float32) + b1_ref[...]
    h1 = jnp.maximum(h1, 0.0)

    # ---- layer 2: Linear(400 + act, 300) + ReLU ----
    # cat([h1, a], axis=1) @ W2  ==  h1 @ W2[:400] + a @ W2[400:]
    h2 = jnp.dot(h1.astype(mm_dtype), w2h_ref[...],
                 preferred_element_type=jnp.float32) + b2_ref[...]
    # a @ W2[400:] has contraction depth = act_size (tiny): do it as act_size
    # unrolled broadcast-FMAs on the VPU instead of wasting an MXU pass.
    a_f32 = a_ref[...]                              # (tb, act_size) f32
    for i in range(act_size):                       # static unroll at trace time
        h2 = h2 + a_f32[:, i:i + 1] * w2a_ref[i, :]  # (tb,1) * (300,) -> (tb,300)
    h2 = jnp.maximum(h2, 0.0)

    # ---- layer 3: Linear(300, 1) as VPU mul + lane (XLU) reduction ----
    q = jnp.sum(h2 * w3_ref[...], axis=-1, keepdims=True) + b3_ref[0, 0]
    o_ref[...] = q.astype(o_ref.dtype)


@functools.partial(jax.jit, static_argnames=("tile_b", "use_bf16"))
def ddpg_critic_forward(x, a, params, tile_b=512, use_bf16=True):
    """x: (B, obs_size) f32, a: (B, act_size) f32 -> (B, 1) f32."""
    B, obs_size = x.shape
    act_size = a.shape[1]

    w1, b1 = params["w1"], params["b1"]            # (obs,400), (1,400)
    w2, b2 = params["w2"], params["b2"]            # (400+act,300), (1,300)
    w3, b3 = params["w3"], params["b3"]            # (1,300), (1,1)
    w2h = w2[:OBS_HID]                             # (400, 300) -> MXU
    w2a = w2[OBS_HID:]                             # (act, 300) -> VPU FMAs (kept f32)

    mm_dtype = jnp.bfloat16 if use_bf16 else jnp.float32
    w1_mm = w1.astype(mm_dtype)                    # cast once in the wrapper,
    w2h_mm = w2h.astype(mm_dtype)                  # halves the resident weight DMA too

    # Batch tile: multiple of 8 (sublane), capped at tile_b, and chosen so the
    # "parallel" batch axis has >= 2 tiles (both v7x TensorCores get work even
    # when B <= tile_b).  Partial last block is handled by Pallas write-masking,
    # so no padding / slicing copies are needed.
    tb = max(8, min(tile_b, _round_up(pl.cdiv(B, 2), 8)))
    grid = (pl.cdiv(B, tb),)

    const = lambda arr: pl.BlockSpec(arr.shape, lambda i: (0,) * arr.ndim)
    kernel = functools.partial(_critic_kernel, act_size=act_size)

    out = pl.pallas_call(
        kernel,
        out_shape=jax.ShapeDtypeStruct((B, 1), jnp.float32),
        grid=grid,
        in_specs=[
            pl.BlockSpec((tb, obs_size), lambda i: (i, 0)),   # x tile
            pl.BlockSpec((tb, act_size), lambda i: (i, 0)),   # a tile
            const(w1_mm), const(b1),                           # VMEM-resident weights
            const(w2h_mm), const(w2a), const(b2),
            const(w3),
            pl.BlockSpec((1, 1), lambda i: (0, 0),
                         memory_space=pltpu.MemorySpace.SMEM),  # scalar bias b3
        ],
        out_specs=pl.BlockSpec((tb, 1), lambda i: (i, 0)),
        compiler_params=pltpu.CompilerParams(
            dimension_semantics=("parallel",)),
    )(x, a, w1_mm, b1, w2h_mm, w2a, b2, w3, b3)

    return out


def init_params(key, obs_size, act_size):
    """Mimic torch.nn.Linear default init: U(-1/sqrt(fan_in), +1/sqrt(fan_in))."""
    ks = jax.random.split(key, 6)

    def linear(kw, kb, fan_in, fan_out):
        bound = 1.0 / jnp.sqrt(jnp.float32(fan_in))
        w = jax.random.uniform(kw, (fan_in, fan_out), jnp.float32, -bound, bound)
        b = jax.random.uniform(kb, (1, fan_out), jnp.float32, -bound, bound)
        return w, b

    w1, b1 = linear(ks[0], ks[1], obs_size, OBS_HID)
    w2, b2 = linear(ks[2], ks[3], OBS_HID + act_size, OUT_HID)
    w3t, b3 = linear(ks[4], ks[5], OUT_HID, 1)     # (300,1), (1,1)
    return {"w1": w1, "b1": b1, "w2": w2, "b2": b2,
            "w3": w3t.reshape(1, OUT_HID), "b3": b3}


def _ref_forward(x, a, p):
    hi = jax.lax.Precision.HIGHEST
    h1 = jnp.maximum(jnp.dot(x, p["w1"], precision=hi) + p["b1"], 0.0)
    cat = jnp.concatenate([h1, a], axis=1)
    h2 = jnp.maximum(jnp.dot(cat, p["w2"], precision=hi) + p["b2"], 0.0)
    return jnp.dot(h2, p["w3"].T, precision=hi) + p["b3"]


if __name__ == "__main__":
    OBS_SIZE = 24    # BipedalWalker-v3 observation size
    ACT_SIZE = 4     # BipedalWalker-v3 action size
    BATCH = 100      # not tile-divisible -> exercises the masked partial block

    key = jax.random.PRNGKey(0)
    k_x, k_a, k_p = jax.random.split(key, 3)
    x = jax.random.normal(k_x, (BATCH, OBS_SIZE), jnp.float32)
    a = jax.random.uniform(k_a, (BATCH, ACT_SIZE), jnp.float32, -1.0, 1.0)
    params = init_params(k_p, OBS_SIZE, ACT_SIZE)

    ref = _ref_forward(x, a, params)

    # bf16-MXU fast path (default).
    out = jax.block_until_ready(ddpg_critic_forward(x, a, params))
    assert out.shape == (BATCH, 1), out.shape
    assert jnp.allclose(out, ref, atol=3e-2, rtol=3e-2), (
        "bf16 path mismatch vs pure-JAX reference: max abs err = "
        f"{jnp.max(jnp.abs(out - ref))}")

    # Exact-parity f32 path.
    out_f32 = jax.block_until_ready(
        ddpg_critic_forward(x, a, params, use_bf16=False))
    assert jnp.allclose(out_f32, ref, atol=5e-4, rtol=5e-4), (
        "f32 path mismatch vs pure-JAX reference: max abs err = "
        f"{jnp.max(jnp.abs(out_f32 - ref))}")

    print("KERNEL_OK")
</pallas_src>

<mosaic_0001>
module attributes {stable_mosaic.version = 11 : i64} {
  func.func @_critic_kernel(%arg0: i32, %arg1: memref<56x24xf32, #tpu.memory_space<vmem>>, %arg2: memref<56x4xf32, #tpu.memory_space<vmem>>, %arg3: memref<24x400xbf16, #tpu.memory_space<vmem>>, %arg4: memref<1x400xf32, #tpu.memory_space<vmem>>, %arg5: memref<400x300xbf16, #tpu.memory_space<vmem>>, %arg6: memref<4x300xf32, #tpu.memory_space<vmem>>, %arg7: memref<1x300xf32, #tpu.memory_space<vmem>>, %arg8: memref<1x300xf32, #tpu.memory_space<vmem>>, %arg9: memref<1x1xf32, #tpu.memory_space<smem>>, %arg10: memref<56x1xf32, #tpu.memory_space<vmem>>) attributes {dimension_semantics = [#tpu.dimension_semantics<parallel>], iteration_bounds = array<i64: 2>, scalar_prefetch = 0 : i64, scratch_operands = 0 : i64, tpu.core_type = #tpu.core_type<tc>, window_params = [{transform_indices = @transform_0, window_bounds = array<i64: 56, 24>}, {transform_indices = @transform_1, window_bounds = array<i64: 56, 4>}, {pipeline_mode = #tpu.pipeline_mode<synchronous>, transform_indices = @transform_2, window_bounds = array<i64: 24, 400>}, {pipeline_mode = #tpu.pipeline_mode<synchronous>, transform_indices = @transform_3, window_bounds = array<i64: 1, 400>}, {pipeline_mode = #tpu.pipeline_mode<synchronous>, transform_indices = @transform_4, window_bounds = array<i64: 400, 300>}, {pipeline_mode = #tpu.pipeline_mode<synchronous>, transform_indices = @transform_5, window_bounds = array<i64: 4, 300>}, {pipeline_mode = #tpu.pipeline_mode<synchronous>, transform_indices = @transform_6, window_bounds = array<i64: 1, 300>}, {pipeline_mode = #tpu.pipeline_mode<synchronous>, transform_indices = @transform_7, window_bounds = array<i64: 1, 300>}, {transform_indices = @transform_8, window_bounds = array<i64: 1, 1>}, {transform_indices = @transform_9, window_bounds = array<i64: 56, 1>}]} {
    %c0 = arith.constant 0 : index
    %c0_0 = arith.constant 0 : index
    %0 = vector.load %arg1[%c0, %c0_0] : memref<56x24xf32, #tpu.memory_space<vmem>>, vector<56x24xf32>
    %1 = arith.truncf %0 : vector<56x24xf32> to vector<56x24xbf16>
    %c0_1 = arith.constant 0 : index
    %c0_2 = arith.constant 0 : index
    %2 = vector.load %arg3[%c0_1, %c0_2] : memref<24x400xbf16, #tpu.memory_space<vmem>>, vector<24x400xbf16>
    %cst = arith.constant dense<0.000000e+00> : vector<56x400xf32>
    %3 = tpu.matmul %1, %2, %cst {dimension_numbers = #tpu.dot_dimension_numbers<[1], [0], [0], [1], [0, 0, 1, 1], [], []>} : vector<56x24xbf16>, vector<24x400xbf16>, vector<56x400xf32> -> vector<56x400xf32>
    %c0_3 = arith.constant 0 : index
    %c0_4 = arith.constant 0 : index
    %4 = vector.load %arg4[%c0_3, %c0_4] : memref<1x400xf32, #tpu.memory_space<vmem>>, vector<1x400xf32>
    %5 = vector.broadcast %4 : vector<1x400xf32> to vector<56x400xf32>
    %6 = arith.addf %3, %5 : vector<56x400xf32>
    %cst_5 = arith.constant 0.000000e+00 : f32
    %7 = vector.broadcast %cst_5 : f32 to vector<56x400xf32>
    %8 = arith.maximumf %6, %7 : vector<56x400xf32>
    %9 = arith.truncf %8 : vector<56x400xf32> to vector<56x400xbf16>
    %c0_6 = arith.constant 0 : index
    %c0_7 = arith.constant 0 : index
    %10 = vector.load %arg5[%c0_6, %c0_7] : memref<400x300xbf16, #tpu.memory_space<vmem>>, vector<400x300xbf16>
    %cst_8 = arith.constant dense<0.000000e+00> : vector<56x300xf32>
    %11 = tpu.matmul %9, %10, %cst_8 {dimension_numbers = #tpu.dot_dimension_numbers<[1], [0], [0], [1], [0, 0, 1, 1], [], []>} : vector<56x400xbf16>, vector<400x300xbf16>, vector<56x300xf32> -> vector<56x300xf32>
    %c0_9 = arith.constant 0 : index
    %c0_10 = arith.constant 0 : index
    %12 = vector.load %arg7[%c0_9, %c0_10] : memref<1x300xf32, #tpu.memory_space<vmem>>, vector<1x300xf32>
    %13 = vector.broadcast %12 : vector<1x300xf32> to vector<56x300xf32>
    %14 = arith.addf %11, %13 : vector<56x300xf32>
    %c0_11 = arith.constant 0 : index
    %c0_12 = arith.constant 0 : index
    %15 = vector.load %arg2[%c0_11, %c0_12] : memref<56x4xf32, #tpu.memory_space<vmem>>, vector<56x4xf32>
    %16 = vector.extract_strided_slice %15 {offsets = [0, 0], sizes = [56, 1], strides = [1, 1]} : vector<56x4xf32> to vector<56x1xf32>
    %c0_13 = arith.constant 0 : index
    %c0_14 = arith.constant 0 : index
    %17 = vector.load %arg6[%c0_13, %c0_14] : memref<4x300xf32, #tpu.memory_space<vmem>>, vector<1x300xf32>
    %18 = vector.shape_cast %17 : vector<1x300xf32> to vector<300xf32>
    %19 = vector.shape_cast %18 : vector<300xf32> to vector<1x300xf32>
    %20 = vector.broadcast %16 : vector<56x1xf32> to vector<56x300xf32>
    %21 = vector.broadcast %19 : vector<1x300xf32> to vector<56x300xf32>
    %22 = arith.mulf %20, %21 : vector<56x300xf32>
    %23 = arith.addf %14, %22 : vector<56x300xf32>
    %24 = vector.extract_strided_slice %15 {offsets = [0, 1], sizes = [56, 1], strides = [1, 1]} : vector<56x4xf32> to vector<56x1xf32>
    %c1 = arith.constant 1 : index
    %c0_15 = arith.constant 0 : index
    %25 = vector.load %arg6[%c1, %c0_15] : memref<4x300xf32, #tpu.memory_space<vmem>>, vector<1x300xf32>
    %26 = vector.shape_cast %25 : vector<1x300xf32> to vector<300xf32>
    %27 = vector.shape_cast %26 : vector<300xf32> to vector<1x300xf32>
    %28 = vector.broadcast %24 : vector<56x1xf32> to vector<56x300xf32>
    %29 = vector.broadcast %27 : vector<1x300xf32> to vector<56x300xf32>
    %30 = arith.mulf %28, %29 : vector<56x300xf32>
    %31 = arith.addf %23, %30 : vector<56x300xf32>
    %32 = vector.extract_strided_slice %15 {offsets = [0, 2], sizes = [56, 1], strides = [1, 1]} : vector<56x4xf32> to vector<56x1xf32>
    %c2 = arith.constant 2 : index
    %c0_16 = arith.constant 0 : index
    %33 = vector.load %arg6[%c2, %c0_16] : memref<4x300xf32, #tpu.memory_space<vmem>>, vector<1x300xf32>
    %34 = vector.shape_cast %33 : vector<1x300xf32> to vector<300xf32>
    %35 = vector.shape_cast %34 : vector<300xf32> to vector<1x300xf32>
    %36 = vector.broadcast %32 : vector<56x1xf32> to vector<56x300xf32>
    %37 = vector.broadcast %35 : vector<1x300xf32> to vector<56x300xf32>
    %38 = arith.mulf %36, %37 : vector<56x300xf32>
    %39 = arith.addf %31, %38 : vector<56x300xf32>
    %40 = vector.extract_strided_slice %15 {offsets = [0, 3], sizes = [56, 1], strides = [1, 1]} : vector<56x4xf32> to vector<56x1xf32>
    %c3 = arith.constant 3 : index
    %c0_17 = arith.constant 0 : index
    %41 = vector.load %arg6[%c3, %c0_17] : memref<4x300xf32, #tpu.memory_space<vmem>>, vector<1x300xf32>
    %42 = vector.shape_cast %41 : vector<1x300xf32> to vector<300xf32>
    %43 = vector.shape_cast %42 : vector<300xf32> to vector<1x300xf32>
    %44 = vector.broadcast %40 : vector<56x1xf32> to vector<56x300xf32>
    %45 = vector.broadcast %43 : vector<1x300xf32> to vector<56x300xf32>
    %46 = arith.mulf %44, %45 : vector<56x300xf32>
    %47 = arith.addf %39, %46 : vector<56x300xf32>
    %cst_18 = arith.constant 0.000000e+00 : f32
    %48 = vector.broadcast %cst_18 : f32 to vector<56x300xf32>
    %49 = arith.maximumf %47, %48 : vector<56x300xf32>
    %c0_19 = arith.constant 0 : index
    %c0_20 = arith.constant 0 : index
    %50 = vector.load %arg8[%c0_19, %c0_20] : memref<1x300xf32, #tpu.memory_space<vmem>>, vector<1x300xf32>
    %51 = vector.broadcast %50 : vector<1x300xf32> to vector<56x300xf32>
    %52 = arith.mulf %49, %51 : vector<56x300xf32>
    %cst_21 = arith.constant dense<0.000000e+00> : vector<56xf32>
    %53 = vector.multi_reduction <add>, %52, %cst_21 [1] : vector<56x300xf32> to vector<56xf32>
    %54 = vector.shape_cast %53 : vector<56xf32> to vector<56x1xf32>
    %c0_22 = arith.constant 0 : index
    %c0_23 = arith.constant 0 : index
    %55 = memref.load %arg9[%c0_22, %c0_23] : memref<1x1xf32, #tpu.memory_space<smem>>
    %56 = vector.broadcast %55 : f32 to vector<56x1xf32>
    %57 = arith.addf %54, %56 : vector<56x1xf32>
    %c0_24 = arith.constant 0 : index
    %c0_25 = arith.constant 0 : index
    %58 = vector.load %arg10[%c0_24, %c0_25] : memref<56x1xf32, #tpu.memory_space<vmem>>, vector<56x1xf32>
    tpu.vector_store %arg10[%c0_24, %c0_25], %57 {strides = array<i32>} : memref<56x1xf32, #tpu.memory_space<vmem>>, vector<56x1xf32>,
    return
  }
  func.func @transform_0(%arg0: i32) -> (i32, i32) {
    %c0_i32 = arith.constant 0 : i32
    %c0_i32_0 = arith.constant 0 : i32
    return %arg0, %c0_i32 : i32, i32
  }
  func.func @transform_1(%arg0: i32) -> (i32, i32) {
    %c0_i32 = arith.constant 0 : i32
    %c0_i32_0 = arith.constant 0 : i32
    return %arg0, %c0_i32 : i32, i32
  }
  func.func @transform_2(%arg0: i32) -> (i32, i32) {
    %c0_i32 = arith.constant 0 : i32
    %c0_i32_0 = arith.constant 0 : i32
    %c0_i32_1 = arith.constant 0 : i32
    return %c0_i32, %c0_i32_0 : i32, i32
  }
  func.func @transform_3(%arg0: i32) -> (i32, i32) {
    %c0_i32 = arith.constant 0 : i32
    %c0_i32_0 = arith.constant 0 : i32
    %c0_i32_1 = arith.constant 0 : i32
    return %c0_i32, %c0_i32_0 : i32, i32
  }
  func.func @transform_4(%arg0: i32) -> (i32, i32) {
    %c0_i32 = arith.constant 0 : i32
    %c0_i32_0 = arith.constant 0 : i32
    %c0_i32_1 = arith.constant 0 : i32
    return %c0_i32, %c0_i32_0 : i32, i32
  }
  func.func @transform_5(%arg0: i32) -> (i32, i32) {
    %c0_i32 = arith.constant 0 : i32
    %c0_i32_0 = arith.constant 0 : i32
    %c0_i32_1 = arith.constant 0 : i32
    return %c0_i32, %c0_i32_0 : i32, i32
  }
  func.func @transform_6(%arg0: i32) -> (i32, i32) {
    %c0_i32 = arith.constant 0 : i32
    %c0_i32_0 = arith.constant 0 : i32
    %c0_i32_1 = arith.constant 0 : i32
    return %c0_i32, %c0_i32_0 : i32, i32
  }
  func.func @transform_7(%arg0: i32) -> (i32, i32) {
    %c0_i32 = arith.constant 0 : i32
    %c0_i32_0 = arith.constant 0 : i32
    %c0_i32_1 = arith.constant 0 : i32
    return %c0_i32, %c0_i32_0 : i32, i32
  }
  func.func @transform_8(%arg0: i32) -> (i32, i32) {
    %c0_i32 = arith.constant 0 : i32
    %c0_i32_0 = arith.constant 0 : i32
    %c0_i32_1 = arith.constant 0 : i32
    return %c0_i32, %c0_i32_0 : i32, i32
  }
  func.func @transform_9(%arg0: i32) -> (i32, i32) {
    %c0_i32 = arith.constant 0 : i32
    %c0_i32_0 = arith.constant 0 : i32
    return %arg0, %c0_i32 : i32, i32
  }
}

</mosaic_0001>

<bundles_post_ra>
// kernel: ddpg_critic_forward.1
= control target key start
LH: loop header
LB: loop body
LE: loop exit
PB: predicated region body
PF: predicated region fallthrough
CT: control target
= control target key end

     0   :  { %s3776_s0 = inlined_call_operand.vmem [shape: f32[100,24], index: 0, kind: input, shape index: {}]   ;;  %s3777_s1 = inlined_call_operand.vmem [shape: f32[100,4], index: 1, kind: input, shape index: {}]   ;;  %s3778_s2 = inlined_call_operand.vmem [shape: bf16[24,400], index: 2, kind: input, shape index: {}]   ;;  %s3779_s3 = inlined_call_operand.vmem [shape: f32[1,400], index: 3, kind: input, shape index: {}]   ;;  %s3780_s4 = inlined_call_operand.vmem [shape: bf16[400,300], index: 4, kind: input, shape index: {}]   ;;  %s3781_s5 = inlined_call_operand.vmem [shape: f32[4,300], index: 5, kind: input, shape index: {}]   ;;  %s3782_s6 = inlined_call_operand.vmem [shape: f32[1,300], index: 6, kind: input, shape index: {}]   ;;  %s3783_s7 = inlined_call_operand.vmem [shape: f32[1,300], index: 7, kind: input, shape index: {}]   ;;  %s3784_s8 = inlined_call_operand.<no memory space> [shape: f32[1,1], index: 8, kind: input, shape index: {}]   ;;  %s3785_s9 = inlined_call_operand.vmem [shape: f32[100,1], index: 9, kind: output, shape index: {}]  }
   0x1   :  { %14 = sst [smem:[#allocation2]] %s3784_s8 }
   0x2   :  { %s2757_s11 = smov 0   ;;  %s2759_s12 = smov 0  }
   0x3   :  { %s2761_s13 = smov 0  }
   0x4 LB: > { %s2770_s8 = sadd.s32 4294967295, %s2666_s13   ;;  %s2772_s14 = sadd.s32 1, %s2666_s13   ;;  %s2666_s13 = sphi %s2761_s13, %s3897_s13   ;;  %s2662_s12 = sphi %s2759_s12, %s3896_s12   ;;  %s2658_s11 = sphi %s2757_s11, %s3895_s11  }
   0x5   : > { %s223_s15 = ssub.s32 %s2666_s13, %s2772_s14  ;;  %s226_s16 = sadd.s32 1, %s2662_s12 }
   0x6   : > { %p224_p0 = scmp.eq.s32.totalorder %s223_s15, 0  ;;  %p236_p1 = scmp.ne.s32.totalorder %s2662_s12, %s2658_s11 }
   0x7   : > { %p237_p2 = scmp.eq.s32.totalorder %s2770_s8, 1  ;;  %p2212_p3 = scmp.ge.s32.totalorder %s2666_s13, 1 }
   0x8   : > { %s2780_s17 = scalar_select %p224_p0, %s2662_s12, %s226_s16  }
   0x9   : > { %p2782_p4 = por %p237_p2, %p236_p1  ;;  %p316_p5 = scmp.lt.s32.totalorder %s2666_s13, 3 }
   0xb   : > { %p317_p6 = pnand %p2212_p3, %p316_p5 }
   0xd   : > { %320 = sbr.rel (%p317_p6) target bundleno = 758 (0x2f6), region = 56 }
  0x14   : > { %v2498_v0 = vld [vmem:[%s3778_s2 + $0x4] ss:$16 sps:$4 sm:$0xff]   ;;  %v2500_v1 = vld [vmem:[%s3778_s2] ss:$16 sps:$4 sm:$0xff]   ;;  %vm480_vm0 = vcmask 1043456   ;;  %v2700_v3 = vmov 0  }
  0x15   : > { %v413_v2 = vld [vmem:[%s3778_s2 + $0x20] sm:$0xff]  ;;  %525 = vmatprep.mubr.bf16.mxu0 %v2700_v3  ;;  %s2797_s25 = smul.u32 7, %s2770_s8  ;;  %596 = vmatprep.mubr.bf16.mxu1 %v2700_v3  ;;  %v2503_v6 = vld [vmem:[%s3778_s2 + $0xc] ss:$16 sps:$4 sm:$0xff]   ;;  %v2505_v7 = vld [vmem:[%s3778_s2 + $0x8] ss:$16 sps:$4 sm:$0xff]  }
  0x16   : > { %493 = vmatprep.subr.bf16.mxu0 %v2498_v0  ;;  %v2220_v4 = vcombine.high %v413_v2, %v413_v2  ;;  %v2219_v5 = vcombine.low %v413_v2, %v413_v2  ;;  %2491 = vset.pattern.permute.xlu1 %v2700_v3  ;;  %v414_v8 = vld [vmem:[%s3778_s2 + $0x28] sm:$0xff]  ;;  %v2510_v12 = vld [vmem:[%s3780_s4 + $0x4] ss:$12 sps:$4 sm:$0xff]   ;;  %vm467_vm1 = vcmask 195584   ;;  %v2516_v22 = vld [vmem:[%s3780_s4 + $0x34] ss:$12 sps:$4 sm:$0xff]  }
  0x17   : > { %494 = vmatpush1.bf16.msra.mxu0 %v2500_v1  ;;  %p369_p7 = scmp.lt.s32.totalorder %s2797_s25, 12  ;;  %2490 = vset.pattern.permute.xlu0 %v2700_v3  ;;  %v2222_v10 = vcombine.high %v414_v8, %v414_v8  ;;  %v2221_v11 = vcombine.low %v414_v8, %v414_v8  ;;  %v2508_v17 = vld [vmem:[%s3780_s4] ss:$12 sps:$4 sm:$0xff]   ;;  %v2513_v18 = vld [vmem:[%s3780_s4 + $0x1c] ss:$12 sps:$4 sm:$0xff]   ;;  %vm1196_vm2 = vcmask 130048  }
  0x18   : > { %2223 = vmatprep.subr.msk.bf16.mxu0 %vm480_vm0, %v2220_v4  ;;  %v482_v9 = vsel %vm480_vm0, %v2219_v5, 0  ;;  %564 = vmatprep.subr.bf16.mxu1 %v2503_v6  ;;  %v2511_v21 = vld [vmem:[%s3780_s4 + $0x18] ss:$12 sps:$4 sm:$0xff]   ;;  %v2514_v24 = vld [vmem:[%s3780_s4 + $0x30] ss:$12 sps:$4 sm:$0xff]   ;;  %vm1904_vm3 = vcmask 359424  }
  0x19   : > { %s2818_s16 = scalar_select %p369_p7, %s2797_s25, 12  ;;  %565 = vmatpush1.bf16.msra.mxu1 %v2505_v7  ;;  %v488_v13 = vsel %vm480_vm0, %v2221_v11, 0  ;;  %v2519_v25 = vld [vmem:[%s3780_s4 + $0x4c] ss:$12 sps:$4 sm:$0xff]   ;;  %v2535_v26 = vld [vmem:[%s3780_s4 + $0xc8] ss:$12 sps:$4 sm:$0xff]  }
  0x1a   : > { %2228 = vmatprep.subr.msk.bf16.mxu1 %vm480_vm0, %v2222_v10  ;;  %v2536_v27 = vld [vmem:[%s3780_s4 + $0x8] ss:$12 sps:$4 sm:$0xff]   ;;  %v2540_v31 = vld [vmem:[%s3780_s4 + $0xe0] ss:$12 sps:$4 sm:$0xff]   ;;  %v2522_v32 = vld [vmem:[%s3780_s4 + $0x64] ss:$12 sps:$4 sm:$0xff]  }
  0x1b   : > { %496 = vmatpush1.bf16.msra.mxu0 %v482_v9  ;;  %s2213_s19 = sshll.u32 %s2818_s16, 3  ;;  %v2517_v30 = vld [vmem:[%s3780_s4 + $0x48] ss:$12 sps:$4 sm:$0xff]   ;;  %v2541_v33 = vld [vmem:[%s3780_s4 + $0x20] ss:$12 sps:$4 sm:$0xff]   ;;  %s1939_s26 = sld [smem:[#allocation2]] }
  0x1c   : > { %s2828_s22 = scalar_lea.vmem %s3776_s0, %s2213_s19  ;;  %1209 = vmatprep.subr.bf16.mxu0 %v2510_v12  ;;  %v2520_v35 = vld [vmem:[%s3780_s4 + $0x60] ss:$12 sps:$4 sm:$0xff]   ;;  %v2545_v36 = vld [vmem:[%s3780_s4 + $0xf8] ss:$12 sps:$4 sm:$0xff]   ;;  %v2525_v37 = vld [vmem:[%s3780_s4 + $0x7c] ss:$12 sps:$4 sm:$0xff]   ;;  %s386_s15 = scalar_lea.vmem %s3777_s1, %s2213_s19 }
  0x1d   : > { %v398_v14 = vld [vmem:[%s2828_s22] sm:$0xff]  ;;  %v399_v15 = vld [vmem:[%s2828_s22 + $0x8] sm:$0xff]  ;;  %567 = vmatpush1.bf16.msra.mxu1 %v488_v13  ;;  %v400_v19 = vld [vmem:[%s2828_s22 + $0x10] sm:$0xff]  ;;  %s361_s27 = sand.u32 1, %s2658_s11   ;;  %vm1948_vm4 = vcmask 7168   ;;  %s1964_s11 = ssub.s32 (%p2782_p4), 13, %s2797_s25 }
  0x1e   : > { %v405_v16 = vpack.c.bf16 %v399_v15, %v398_v14  ;;  %v401_v20 = vld [vmem:[%s2828_s22 + $0x18] sm:$0xff]  ;;  %v402_v28 = vld [vmem:[%s2828_s22 + $0x20] sm:$0xff]  ;;  %v403_v29 = vld [vmem:[%s2828_s22 + $0x28] sm:$0xff]  ;;  %2332 = vmatprep.subr.bf16.mxu1 %v2535_v26  ;;  %s2331_s29 = smul.u32 (%p2782_p4), 56, %s2770_s8  ;;  %p1965_p8 = scmp.lt.s32.totalorder (%p2782_p4), %s1964_s11, 7 }
  0x1f   : > { %v406_v23 = vpack.c.bf16 %v401_v20, %v400_v19  ;;  %v407_v34 = vpack.c.bf16 %v403_v29, %v402_v28  ;;  %v2546_v38 = vld [vmem:[%s3780_s4 + $0x38] ss:$12 sps:$4 sm:$0xff]   ;;  %v2550_v39 = vld [vmem:[%s3780_s4 + $0x110] ss:$12 sps:$4 sm:$0xff]   ;;  %v2528_v42 = vld [vmem:[%s3780_s4 + $0x94] ss:$12 sps:$4 sm:$0xff]   ;;  %v417_v19 = vlaneseq }
  0x20   : > { %2224 = vmatmul.mubr.msk.bf16.vlgmr.msra.gmra.mrb[0].mxu0 %vm467_vm1, %v405_v16  ;;  %2229 = vmatmul.mubr.msk.bf16.vlgmr.msra.gmra.mrb[0].mxu1 %vm467_vm1, %v405_v16  ;;  %v404_v40 = vld [vmem:[%s2828_s22 + $0x30] sm:$0xff]  ;;  %v2523_v41 = vld [vmem:[%s3780_s4 + $0x78] ss:$12 sps:$4 sm:$0xff]   ;;  %v2560_v50 = vld [vmem:[%s3780_s4 + $0x140] ss:$12 sps:$4 sm:$0xff]   ;;  %v2703_v20 = vmov 3   ;;  %s3727_s13 = scalar_lea.vmem (%p2782_p4), %s3785_s9, %s2331_s29  }
  0x21   : > { %535 = vmatprep.mubr.bf16.mxu0 %v2700_v3  ;;  %606 = vmatprep.mubr.bf16.mxu1 %v2700_v3  ;;  %v2551_v43 = vld [vmem:[%s3780_s4 + $0x50] ss:$12 sps:$4 sm:$0xff]   ;;  %v408_v44 = vpack.c.bf16 %v404_v40, %v404_v40  ;;  %v2555_v46 = vld [vmem:[%s3780_s4 + $0x128] ss:$12 sps:$4 sm:$0xff]   ;;  %v2531_v47 = vld [vmem:[%s3780_s4 + $0xac] ss:$12 sps:$4 sm:$0xff]  }
  0x22   : > { %1210 = vmatpush1.bf16.msra.mxu0 %v2508_v17  ;;  %2333 = vmatpush3.bf16.msra.mxu1 %v2536_v27  ;;  %v2526_v45 = vld [vmem:[%s3780_s4 + $0x90] ss:$12 sps:$4 sm:$0xff]   ;;  %v2556_v48 = vld [vmem:[%s3780_s4 + $0x68] ss:$12 sps:$4 sm:$0xff]   ;;  %v2561_v52 = vld [vmem:[%s3780_s4 + $0x80] ss:$12 sps:$4 sm:$0xff]  }
  0x23   : > { %1211 = vmatprep.subr.bf16.mxu0 %v2513_v18  ;;  %2334 = vmatprep.subr.bf16.mxu1 %v2540_v31  ;;  %v2529_v49 = vld [vmem:[%s3780_s4 + $0xa8] ss:$12 sps:$4 sm:$0xff]   ;;  %v2534_v51 = vld [vmem:[%s3780_s4 + $0xc4] ss:$12 sps:$4 sm:$0xff]   ;;  %v2532_v53 = vld [vmem:[%s3780_s4 + $0xc0] ss:$12 sps:$4 sm:$0xff]  }
  0x24   : > { %v2539_v54 = vld [vmem:[%s3780_s4 + $0xdc] ss:$12 sps:$4 sm:$0xff]   ;;  %v2537_v55 = vld [vmem:[%s3780_s4 + $0xd8] ss:$12 sps:$4 sm:$0xff]   ;;  %v2544_v56 = vld [vmem:[%s3780_s4 + $0xf4] ss:$12 sps:$4 sm:$0xff]  }
  0x25   : > { %v2542_v57 = vld [vmem:[%s3780_s4 + $0xf0] ss:$12 sps:$4 sm:$0xff]   ;;  %v2549_v58 = vld [vmem:[%s3780_s4 + $0x10c] ss:$12 sps:$4 sm:$0xff]   ;;  %v2547_v59 = vld [vmem:[%s3780_s4 + $0x108] ss:$12 sps:$4 sm:$0xff]  }
  0x26   : > { %1212 = vmatpush1.bf16.msra.mxu0 %v2511_v21  ;;  %2335 = vmatpush3.bf16.msra.mxu1 %v2541_v33  ;;  %v2554_v60 = vld [vmem:[%s3780_s4 + $0x124] ss:$12 sps:$4 sm:$0xff]   ;;  %v2552_v61 = vld [vmem:[%s3780_s4 + $0x120] ss:$12 sps:$4 sm:$0xff]   ;;  %v2559_v62 = vld [vmem:[%s3780_s4 + $0x13c] ss:$12 sps:$4 sm:$0xff]  }
  0x27   : > { %1213 = vmatprep.subr.bf16.mxu0 %v2516_v22  ;;  %2336 = vmatprep.subr.bf16.mxu1 %v2545_v36  ;;  %v2557_v63 = vld [vmem:[%s3780_s4 + $0x138] ss:$12 sps:$4 sm:$0xff]   ;;  %v2564_v0 = vld [vmem:[%s3780_s4 + $0x154] ss:$12 sps:$4 sm:$0xff]   ;;  %v2562_v2 = vld [vmem:[%s3780_s4 + $0x150] ss:$12 sps:$4 sm:$0xff]  }
  0x28   : > { %2225 = vmatmul.mubr.msk.bf16.gmra.mrb[4].mxu0 %vm467_vm1, %v406_v23  ;;  %2230 = vmatmul.mubr.msk.bf16.gmra.mrb[4].mxu1 %vm467_vm1, %v406_v23  ;;  %v2565_v1 = vld [vmem:[%s3780_s4 + $0x158] ss:$12 sps:$4 sm:$0xff]   ;;  %v2570_v6 = vld [vmem:[%s3780_s4 + $0x170] ss:$12 sps:$4 sm:$0xff]   ;;  %v2567_v7 = vld [vmem:[%s3780_s4 + $0x168] ss:$12 sps:$4 sm:$0xff]  }
  0x29   : > { %545 = vmatprep.mubr.bf16.mxu0 %v2700_v3  ;;  %616 = vmatprep.mubr.bf16.mxu1 %v2700_v3  ;;  %v2566_v4 = vld [vmem:[%s3780_s4 + $0x98] ss:$12 sps:$4 sm:$0xff]   ;;  %v2571_v8 = vld [vmem:[%s3780_s4 + $0xb0] ss:$12 sps:$4 sm:$0xff]   ;;  %v1480_v13 = vld [vmem:[%s386_s15 + $0x8] sm:$0xff]  ;;  %v2701_v17 = vmov 1  }
  0x2a   : > { %1214 = vmatpush1.bf16.msra.mxu0 %v2514_v24  ;;  %2337 = vmatpush3.bf16.msra.mxu1 %v2546_v38  ;;  %v2569_v5 = vld [vmem:[%s3780_s4 + $0x16c] ss:$12 sps:$4 sm:$0xff]   ;;  %v2574_v9 = vld [vmem:[%s3780_s4 + $0x184] ss:$12 sps:$4 sm:$0xff]   ;;  %v2702_v18 = vmov 2   ;;  %v418_v21 = vshrl.u32 %v417_v19, 7 }
  0x2b   : > { %1215 = vmatprep.subr.bf16.mxu0 %v2519_v25  ;;  %2338 = vmatprep.subr.bf16.mxu1 %v2550_v39  ;;  %v1481_v10 = vld [vmem:[%s386_s15 + $0x10] sm:$0xff]  ;;  %v1479_v11 = vld [vmem:[%s386_s15] sm:$0xff]  ;;  %v1482_v12 = vld [vmem:[%s386_s15 + $0x18] sm:$0xff]  ;;  %s2396_s22 = smul.u32 56, %s361_s27 }
  0x2c   : > { %1499 = vperm.xlu1 %2491, %v1481_v10   ;;  %1489 = vperm.xlu0 %2490, %v1479_v11   ;;  %v3001_v14 = vld [vmem:[%s386_s15 + $0x28] sm:$0xff]  ;;  %v1483_v15 = vld [vmem:[%s386_s15 + $0x20] sm:$0xff]  ;;  %v1485_v16 = vld [vmem:[%s386_s15 + $0x30] sm:$0xff]  ;;  %v3006_v22 = vsub.s32 0, %v418_v21  ;;  %v3008_v23 = vsub.s32 2, %v418_v21  ;;  %v3013_v25 = vsub.s32 1, %v418_v21 }
  0x2d   : > { %v415_v24 = vld [vmem:[%s3779_s3] sm:$0xf]  ;;  %v431_v26 = vsub.s32 3, %v418_v21  ;;  %s3704_s28 = scalar_lea.vmem [#allocation3], %s2396_s22  }
  0x2e   : > { %1216 = vmatpush1.bf16.msra.mxu0 %v2517_v30  ;;  %2339 = vmatpush3.bf16.msra.mxu1 %v2551_v43  ;;  %v3016_v27 = vrot.slane %v415_v24, %v3006_v22  ;;  %v3019_v28 = vrot.slane %v415_v24, %v3008_v23  ;;  %v3022_v29 = vrot.slane %v415_v24, %v3013_v25 }
  0x2f   : > { %1217 = vmatprep.subr.bf16.mxu0 %v2522_v32  ;;  %2340 = vmatprep.subr.bf16.mxu1 %v2555_v46  ;;  %v3024_v30 = vrot.slane %v415_v24, %v431_v26  ;;  %v2582_v24 = vld [vmem:[%s3780_s4 + $0x1b4] ss:$12 sps:$4 sm:$0xff]  }
  0x30   : > { %2226 = vmatmul.mubr.msk.bf16.gmra.mrb[8].mxu0 %vm467_vm1, %v407_v34  ;;  %2231 = vmatmul.mubr.msk.bf16.gmra.mrb[8].mxu1 %vm467_vm1, %v407_v34 }
  0x31   : > { %555 = vmatprep.mubr.bf16.mxu0 %v2700_v3  ;;  %626 = vmatprep.mubr.bf16.mxu1 %v2700_v3 }
  0x32   : > { %1218 = vmatpush1.bf16.msra.mxu0 %v2520_v35  ;;  %2341 = vmatpush3.bf16.msra.mxu1 %v2556_v48 }
  0x33   : > { %1219 = vmatprep.subr.bf16.mxu0 %v2525_v37  ;;  %2342 = vmatprep.subr.bf16.mxu1 %v2560_v50 }
  0x34   : > { %1504 = vperm.xlu1 %2491, %v1482_v12   ;;  %1494 = vperm.xlu0 %2490, %v1480_v13  }
  0x36   : > { %1220 = vmatpush1.bf16.msra.mxu0 %v2523_v41  ;;  %2343 = vmatpush3.bf16.msra.mxu1 %v2561_v52 }
  0x37   : > { %1221 = vmatprep.subr.bf16.mxu0 %v2528_v42  ;;  %2344 = vmatprep.subr.bf16.mxu1 %v2565_v1  ;;  %v2578_v1 = vld [vmem:[%s3780_s4 + $0x19c] ss:$12 sps:$4 sm:$0xff]  }
  0x38   : > { %2227 = vmatmul.mubr.msk.bf16.gmra.mrb[12].mxu0 %vm467_vm1, %v408_v44  ;;  %2232 = vmatmul.mubr.msk.bf16.gmra.mrb[12].mxu1 %vm467_vm1, %v408_v44 }
  0x39   : > { %1514 = vperm.xlu1 %2491, %v3001_v14   ;;  %1509 = vperm.xlu0 %2490, %v1483_v15  }
  0x3a   : > { %1222 = vmatpush1.bf16.msra.mxu0 %v2526_v45  ;;  %2345 = vmatpush3.bf16.msra.mxu1 %v2566_v4 }
  0x3b   : > { %1223 = vmatprep.subr.bf16.mxu0 %v2531_v47  ;;  %2346 = vmatprep.subr.bf16.mxu1 %v2570_v6 }
  0x3d   : > { %2492 = vset.pattern.permute.xlu1 %v2701_v17  ;;  %1519 = vperm.xlu0 %2490, %v1485_v16  }
  0x3e   : > { %1224 = vmatpush1.bf16.msra.mxu0 %v2529_v49  ;;  %2347 = vmatpush3.bf16.msra.mxu1 %v2571_v8 }
  0x3f   : > { %1225 = vmatprep.subr.bf16.mxu0 %v2534_v51  ;;  %1415 = vmatprep.subr.bf16.mxu1 %v2700_v3 }
  0x40   : > { %1583 = vperm.xlu1 %2492, %v1479_v11  }
  0x41   : > { %2493 = vset.pattern.permute.xlu0 %v2701_v17  ;;  %v2576_v17 = vld [vmem:[%s3780_s4 + $0x198] ss:$12 sps:$4 sm:$0xff]  }
  0x42   : > { %1226 = vmatpush1.bf16.msra.mxu0 %v2532_v53  ;;  %1587 = vperm.xlu0 %2493, %v1480_v13  }
  0x43   : > { %1227 = vmatprep.subr.bf16.mxu0 %v2539_v54 }
  0x44   : > { %1591 = vperm.xlu1 %2492, %v1481_v10  }
  0x46   : > { %1228 = vmatpush1.bf16.msra.mxu0 %v2537_v55  ;;  %1599 = vperm.xlu0 %2493, %v1483_v15  }
  0x47   : > { %1229 = vmatprep.subr.bf16.mxu0 %v2544_v56 }
  0x48   : > { %1595 = vperm.xlu1 %2492, %v1482_v12  }
  0x4a   : > { %1230 = vmatpush1.bf16.msra.mxu0 %v2542_v57  ;;  %1607 = vperm.xlu0 %2493, %v1485_v16  }
  0x4b   : > { %1231 = vmatprep.subr.bf16.mxu0 %v2549_v58 }
  0x4c   : > { %1603 = vperm.xlu1 %2492, %v3001_v14  }
  0x4e   : > { %1232 = vmatpush1.bf16.msra.mxu0 %v2547_v59  ;;  %2495 = vset.pattern.permute.xlu0 %v2702_v18  ;;  %v2572_v59 = vld [vmem:[%s3780_s4 + $0x180] ss:$12 sps:$4 sm:$0xff]  }
  0x4f   : > { %1233 = vmatprep.subr.bf16.mxu0 %v2554_v60  ;;  %1675 = vperm.xlu0 %2495, %v1480_v13   ;;  %v2575_v60 = vld [vmem:[%s3780_s4 + $0x188] ss:$12 sps:$4 sm:$0xff]  }
  0x50   : > { %2494 = vset.pattern.permute.xlu1 %v2702_v18  ;;  %v2579_v18 = vld [vmem:[%s3780_s4 + $0x1a0] ss:$12 sps:$4 sm:$0xff]  }
  0x51   : > { %1671 = vperm.xlu1 %2494, %v1479_v11  }
  0x52   : > { %1234 = vmatpush1.bf16.msra.mxu0 %v2552_v61 }
  0x53   : > { %1235 = vmatprep.subr.bf16.mxu0 %v2559_v62  ;;  %1687 = vperm.xlu0 %2495, %v1483_v15  }
  0x55   : > { %1679 = vperm.xlu1 %2494, %v1481_v10  }
  0x56   : > { %1236 = vmatpush1.bf16.msra.mxu0 %v2557_v63 }
  0x57   : > { %1237 = vmatprep.subr.bf16.mxu0 %v2564_v0  ;;  %1695 = vperm.xlu0 %2495, %v1485_v16  }
  0x59   : > { %1683 = vperm.xlu1 %2494, %v1482_v12  }
  0x5a   : > { %1238 = vmatpush1.bf16.msra.mxu0 %v2562_v2 }
  0x5b   : > { %1239 = vmatprep.subr.bf16.mxu0 %v2569_v5  ;;  %2497 = vset.pattern.permute.xlu0 %v2703_v20 }
  0x5c   : > { %1763 = vperm.xlu0 %2497, %v1480_v13  }
  0x5d   : > { %1691 = vperm.xlu1 %2494, %v3001_v14  }
  0x5e   : > { %1240 = vmatpush1.bf16.msra.mxu0 %v2567_v7 }
  0x5f   : > { %1280 = vmatprep.subr.bf16.mxu0 %v2574_v9 }
  0x60   : > { %1775 = vperm.xlu0 %2497, %v1483_v15  }
  0x61   : > { %2496 = vset.pattern.permute.xlu1 %v2703_v20 }
  0x62   : > { %1759 = vperm.xlu1 %2496, %v1479_v11  }
  0x64   : > { %1783 = vperm.xlu0 %2497, %v1485_v16  }
  0x66   : > { %1767 = vperm.xlu1 %2496, %v1481_v10  }
  0x6a   : > { %1771 = vperm.xlu1 %2496, %v1482_v12  }
  0x6e   : > { %1779 = vperm.xlu1 %2496, %v3001_v14  }
  0xf3   : > { %v527_v31 = vpop.f32.mrb[0].mxu0  ;;  %v598_v32 = vpop.f32.mrb[0].mxu1 }
  0xf4   : > { %v528_v33 = vadd.f32 %v527_v31, %v3016_v27  ;;  %v529_v34 = vpop.f32.mrb[1].mxu0  ;;  %v599_v35 = vadd.f32 %v598_v32, %v3019_v28  ;;  %v600_v36 = vpop.f32.mrb[1].mxu1 }
  0xf5   : > { %v530_v37 = vadd.f32 %v529_v34, %v3022_v29  ;;  %v531_v38 = vpop.f32.mrb[2].mxu0  ;;  %v601_v39 = vadd.f32 %v600_v36, %v3024_v30  ;;  %v602_v40 = vpop.f32.mrb[2].mxu1 }
  0xf6   : > { %v532_v41 = vadd.f32 %v531_v38, %v3016_v27  ;;  %v533_v42 = vpop.f32.mrb[3].mxu0  ;;  %v637_v43 = vmax.f32 %v599_v35, 0.0  ;;  %v603_v44 = vadd.f32 %v602_v40, %v3019_v28  ;;  %v604_v45 = vpop.f32.mrb[3].mxu1  ;;  %v635_v49 = vmax.f32 %v528_v33, 0.0  ;;  %v2583_v38 = vld [vmem:[%s3780_s4 + $0x1b8] ss:$12 sps:$4 sm:$0xff]  }
  0xf7   : > { %v534_v46 = vadd.f32 %v533_v42, %v3022_v29  ;;  %v638_v47 = vmax.f32 %v601_v39, 0.0  ;;  %v605_v48 = vadd.f32 %v604_v45, %v3024_v30  ;;  %v636_v52 = vmax.f32 %v530_v37, 0.0  ;;  %v2580_v37 = vld [vmem:[%s3780_s4 + $0x1b0] ss:$12 sps:$4 sm:$0xff]  }
  0xf8   : > { %v639_v50 = vmax.f32 %v532_v41, 0.0  ;;  %v641_v51 = vmax.f32 %v603_v44, 0.0 }
  0xf9   : > { %v640_v53 = vmax.f32 %v534_v46, 0.0  ;;  %v642_v54 = vmax.f32 %v605_v48, 0.0 }
  0xfa   : > { %v663_v55 = vpack.c.bf16 %v639_v50, %v635_v49  ;;  %v3035_v56 = vpack.c.bf16 %v641_v51, %v637_v43  ;;  %v2586_v43 = vld [vmem:[%s3780_s4 + $0x1cc] ss:$12 sps:$4 sm:$0xff]  }
  0xfb   : > { %v664_v57 = vpack.c.bf16 %v640_v53, %v636_v52  ;;  %v537_v58 = vpop.f32.mrb[4].mxu0  ;;  %v3043_v61 = vpack.c.bf16 %v642_v54, %v638_v47  ;;  %v608_v62 = vpop.f32.mrb[4].mxu1 }
  0xfc   : > { %v538_v63 = vadd.f32 %v537_v58, %v3016_v27  ;;  %v539_v0 = vpop.f32.mrb[5].mxu0  ;;  %v609_v2 = vadd.f32 %v608_v62, %v3019_v28  ;;  %v610_v4 = vpop.f32.mrb[5].mxu1 }
  0xfd   : > { %v540_v5 = vadd.f32 %v539_v0, %v3022_v29  ;;  %v541_v6 = vpop.f32.mrb[6].mxu0  ;;  %1241 = vmatprep.mubr.bf16.mxu0 %v664_v57  ;;  %1383 = vmatprep.mubr.bf16.mxu1 %v664_v57  ;;  %v611_v7 = vadd.f32 %v610_v4, %v3024_v30  ;;  %v612_v8 = vpop.f32.mrb[6].mxu1 }
  0xfe   : > { %v643_v9 = vmax.f32 %v538_v63, 0.0  ;;  %v542_v10 = vadd.f32 %v541_v6, %v3016_v27  ;;  %v543_v11 = vpop.f32.mrb[7].mxu0  ;;  %1242 = vmatmul.mubr.bf16.vlgmr.msra.gmra.mrb[16].mxu0 %v663_v55  ;;  %1384 = vmatmul.mubr.bf16.vlgmr.msra.gmra.mrb[16].mxu1 %v663_v55  ;;  %v645_v12 = vmax.f32 %v609_v2, 0.0  ;;  %v613_v13 = vadd.f32 %v612_v8, %v3019_v28  ;;  %v614_v14 = vpop.f32.mrb[7].mxu1 }
  0xff   : > { %v644_v15 = vmax.f32 %v540_v5, 0.0  ;;  %v544_v16 = vadd.f32 %v543_v11, %v3022_v29  ;;  %1281 = vmatpush1.bf16.msra.mxu0 %v2572_v59  ;;  %1416 = vmatpush1.bf16.msra.mxu1 %v2575_v60  ;;  %v646_v19 = vmax.f32 %v611_v7, 0.0  ;;  %v615_v20 = vadd.f32 %v614_v14, %v3024_v30  ;;  %v2584_v59 = vld [vmem:[%s3780_s4 + $0x1c8] ss:$12 sps:$4 sm:$0xff]   ;;  %v2587_v60 = vld [vmem:[%s3780_s4 + $0x1d0] ss:$12 sps:$4 sm:$0xff]  }
 0x100   : > { %v647_v21 = vmax.f32 %v542_v10, 0.0  ;;  %1282 = vmatprep.subr.bf16.mxu0 %v2578_v1  ;;  %1417 = vmatprep.subr.bf16.mxu1 %v2700_v3  ;;  %v649_v26 = vmax.f32 %v613_v13, 0.0  ;;  %v2590_v1 = vld [vmem:[%s3780_s4 + $0x1e4] ss:$12 sps:$4 sm:$0xff]   ;;  %v2588_v10 = vld [vmem:[%s3780_s4 + $0x1e0] ss:$12 sps:$4 sm:$0xff]  }
 0x101   : > { %v648_v31 = vmax.f32 %v544_v16, 0.0  ;;  %v650_v32 = vmax.f32 %v615_v20, 0.0  ;;  %v2591_v11 = vld [vmem:[%s3780_s4 + $0x1e8] ss:$12 sps:$4 sm:$0xff]  }
 0x102   : > { %v667_v33 = vpack.c.bf16 %v647_v21, %v643_v9  ;;  %v3066_v34 = vpack.c.bf16 %v649_v26, %v645_v12  ;;  %v2594_v16 = vld [vmem:[%s3780_s4 + $0x1fc] ss:$12 sps:$4 sm:$0xff]  }
 0x103   : > { %v668_v35 = vpack.c.bf16 %v648_v31, %v644_v15  ;;  %1283 = vmatpush1.bf16.msra.mxu0 %v2576_v17  ;;  %1418 = vmatpush1.bf16.msra.mxu1 %v2579_v18  ;;  %v547_v36 = vpop.f32.mrb[8].mxu0  ;;  %v3074_v39 = vpack.c.bf16 %v650_v32, %v646_v19  ;;  %v618_v40 = vpop.f32.mrb[8].mxu1  ;;  %v2592_v31 = vld [vmem:[%s3780_s4 + $0x1f8] ss:$12 sps:$4 sm:$0xff]   ;;  %v2595_v32 = vld [vmem:[%s3780_s4 + $0x200] ss:$12 sps:$4 sm:$0xff]  }
 0x104   : > { %v548_v41 = vadd.f32 %v547_v36, %v3016_v27  ;;  %v549_v42 = vpop.f32.mrb[9].mxu0  ;;  %1284 = vmatprep.subr.bf16.mxu0 %v2582_v24  ;;  %1419 = vmatprep.subr.bf16.mxu1 %v2700_v3  ;;  %v619_v44 = vadd.f32 %v618_v40, %v3019_v28  ;;  %v620_v45 = vpop.f32.mrb[9].mxu1  ;;  %v2596_v36 = vld [vmem:[%s3780_s4 + $0x210] ss:$12 sps:$4 sm:$0xff]   ;;  %v2600_v40 = vld [vmem:[%s3780_s4 + $0x228] ss:$12 sps:$4 sm:$0xff]  }
 0x105   : > { %v550_v46 = vadd.f32 %v549_v42, %v3022_v29  ;;  %v551_v47 = vpop.f32.mrb[10].mxu0  ;;  %1251 = vmatprep.mubr.bf16.mxu0 %v668_v35  ;;  %1391 = vmatprep.mubr.bf16.mxu1 %v668_v35  ;;  %v621_v48 = vadd.f32 %v620_v45, %v3024_v30  ;;  %v622_v49 = vpop.f32.mrb[10].mxu1  ;;  %v2606_v42 = vld [vmem:[%s3780_s4 + $0x244] ss:$12 sps:$4 sm:$0xff]  }
 0x106   : > { %v651_v50 = vmax.f32 %v548_v41, 0.0  ;;  %v552_v51 = vadd.f32 %v551_v47, %v3016_v27  ;;  %v553_v52 = vpop.f32.mrb[11].mxu0  ;;  %1252 = vmatmul.mubr.bf16.gmra.mrb[20].mxu0 %v667_v33  ;;  %1392 = vmatmul.mubr.bf16.gmra.mrb[20].mxu1 %v667_v33  ;;  %v653_v53 = vmax.f32 %v619_v44, 0.0  ;;  %v623_v54 = vadd.f32 %v622_v49, %v3019_v28  ;;  %v624_v55 = vpop.f32.mrb[11].mxu1  ;;  %v2603_v41 = vld [vmem:[%s3780_s4 + $0x230] ss:$12 sps:$4 sm:$0xff]  }
 0x107   : > { %v652_v57 = vmax.f32 %v550_v46, 0.0  ;;  %v554_v58 = vadd.f32 %v553_v52, %v3022_v29  ;;  %1285 = vmatpush1.bf16.msra.mxu0 %v2580_v37  ;;  %1420 = vmatpush1.bf16.msra.mxu1 %v2583_v38  ;;  %v654_v62 = vmax.f32 %v621_v48, 0.0  ;;  %v625_v63 = vadd.f32 %v624_v55, %v3024_v30  ;;  %v2599_v37 = vld [vmem:[%s3780_s4 + $0x218] ss:$12 sps:$4 sm:$0xff]   ;;  %v2607_v44 = vld [vmem:[%s3780_s4 + $0x248] ss:$12 sps:$4 sm:$0xff]   ;;  %v1490_v49 = vpop.permute.xlu0 %1489 }
 0x108   : > { %v655_v0 = vmax.f32 %v552_v51, 0.0  ;;  %1286 = vmatprep.subr.bf16.mxu0 %v2586_v43  ;;  %1421 = vmatprep.subr.bf16.mxu1 %v2700_v3  ;;  %v657_v2 = vmax.f32 %v623_v54, 0.0  ;;  %v2602_v38 = vld [vmem:[%s3780_s4 + $0x22c] ss:$12 sps:$4 sm:$0xff]  }
 0x109   : > { %v656_v4 = vmax.f32 %v554_v58, 0.0  ;;  %v658_v5 = vmax.f32 %v625_v63, 0.0  ;;  %v2604_v43 = vld [vmem:[%s3780_s4 + $0x240] ss:$12 sps:$4 sm:$0xff]  }
 0x10a   : > { %v671_v6 = vpack.c.bf16 %v655_v0, %v651_v50  ;;  %v3098_v7 = vpack.c.bf16 %v657_v2, %v653_v53 }
 0x10b   : > { %v672_v8 = vpack.c.bf16 %v656_v4, %v652_v57  ;;  %1287 = vmatpush1.bf16.msra.mxu0 %v2584_v59  ;;  %1422 = vmatpush1.bf16.msra.mxu1 %v2587_v60  ;;  %v557_v9 = vpop.f32.mrb[12].mxu0  ;;  %v3106_v12 = vpack.c.bf16 %v658_v5, %v654_v62  ;;  %v3108_v13 = vpop.f32.mrb[12].mxu1 }
 0x10c   : > { %v558_v14 = vadd.f32 %v557_v9, %v3016_v27  ;;  %1288 = vmatprep.subr.bf16.mxu0 %v2590_v1  ;;  %1423 = vmatprep.subr.bf16.mxu1 %v2700_v3  ;;  %v559_v15 = vpop.f32.mrb[13].mxu0  ;;  %v630_v17 = vpop.f32.mrb[13].mxu1  ;;  %v629_v45 = vadd.f32 %v3108_v13, %v3019_v28 }
 0x10d   : > { %1261 = vmatprep.mubr.bf16.mxu0 %v672_v8  ;;  %1399 = vmatprep.mubr.bf16.mxu1 %v672_v8  ;;  %v560_v18 = vadd.f32 %v559_v15, %v3022_v29  ;;  %v561_v19 = vpop.f32.mrb[14].mxu0  ;;  %v632_v20 = vpop.f32.mrb[14].mxu1  ;;  %v2598_v29 = vld [vmem:[%s3780_s4 + $0x214] ss:$12 sps:$4 sm:$0xff]  }
 0x10e   : > { %v659_v21 = vmax.f32 %v558_v14, 0.0  ;;  %1262 = vmatmul.mubr.bf16.gmra.mrb[24].mxu0 %v671_v6  ;;  %1400 = vmatmul.mubr.bf16.gmra.mrb[24].mxu1 %v671_v6  ;;  %v562_v24 = vpop.f32.mrb[15].mxu0  ;;  %v633_v27 = vpop.f32.mrb[15].mxu1  ;;  %v2316_v14 = vld [vmem:[%s3781_s5 + $0x1] ss:$4 sm:$0x7] }
 0x10f   : > { %v660_v26 = vmax.f32 %v560_v18, 0.0  ;;  %1289 = vmatpush1.bf16.msra.mxu0 %v2588_v10  ;;  %1424 = vmatpush1.bf16.msra.mxu1 %v2591_v11  ;;  %v1495_v28 = vpop.permute.xlu0 %1494 }
 0x110   : > { %1290 = vmatprep.subr.bf16.mxu0 %v2594_v16  ;;  %1425 = vmatprep.subr.bf16.mxu1 %v2700_v3  ;;  %v675_v35 = vpack.c.bf16 %v659_v21, %v659_v21 }
 0x111   : > { %v676_v33 = vpack.c.bf16 %v660_v26, %v660_v26 }
 0x113   : > { %1291 = vmatpush1.bf16.msra.mxu0 %v2592_v31  ;;  %1426 = vmatpush1.bf16.msra.mxu1 %v2595_v32  ;;  %v1510_v52 = vpop.permute.xlu0 %1509 }
 0x114   : > { %1271 = vmatprep.mubr.bf16.mxu0 %v676_v33  ;;  %1292 = vmatprep.subr.bf16.mxu0 %v2598_v29  ;;  %v1614_v29 = vrot.slane %v2316_v14, %v3006_v22 }
 0x115   : > { %1407 = vmatprep.mubr.bf16.mxu1 %v676_v33  ;;  %1427 = vmatprep.subr.bf16.mxu1 %v2700_v3  ;;  %v779_v33 = vld [vmem:[%s3782_s6] sm:$0x7] }
 0x116   : > { %1272 = vmatmul.mubr.bf16.gmra.mrb[28].mxu0 %v675_v35  ;;  %1408 = vmatmul.mubr.bf16.gmra.mrb[28].mxu1 %v675_v35 }
 0x117   : > { %1293 = vmatpush1.bf16.msra.mxu0 %v2596_v36  ;;  %1428 = vmatpush1.bf16.msra.mxu1 %v2599_v37  ;;  %v3184_v54 = vpop.permute.xlu0 %1519  ;;  %v1618_v37 = vrot.slane %v2316_v14, %v3013_v25 }
 0x118   : > { %1294 = vmatprep.subr.bf16.mxu0 %v2602_v38  ;;  %1429 = vmatprep.subr.bf16.mxu1 %v2700_v3  ;;  %v1622_v38 = vrot.slane %v2316_v14, %v3008_v23 }
 0x119   : > { %2308 = vmatprep.mubr.msk.bf16.mxu0 %vm1196_vm2, %v3043_v61  ;;  %2312 = vmatprep.mubr.msk.bf16.mxu1 %vm1196_vm2, %v3043_v61  ;;  %v631_v61 = vadd.f32 %v630_v17, %v3024_v30  ;;  %v661_v30 = vmax.f32 %v629_v45, 0.0  ;;  %v3260_v45 = vrot.slane %v779_v33, %v3008_v23 }
 0x11b   : > { %1295 = vmatpush1.bf16.msra.mxu0 %v2600_v40  ;;  %1430 = vmatpush1.bf16.msra.mxu1 %v2603_v41  ;;  %v3186_v55 = vpop.permute.xlu0 %1587 }
 0x11c   : > { %1296 = vmatprep.subr.bf16.mxu0 %v2606_v42  ;;  %1431 = vmatprep.subr.bf16.mxu1 %v2700_v3  ;;  %v662_v3 = vmax.f32 %v631_v61, 0.0 }
 0x11f   : > { %1297 = vmatpush1.bf16.msra.mxu0 %v2604_v43  ;;  %1432 = vmatpush1.bf16.msra.mxu1 %v2607_v44  ;;  %v3190_v58 = vpop.permute.xlu0 %1599 }
 0x122   : > { %1313 = vmatmul.mubr.bf16.vlgmr.msra.gmra.mrb[16].mxu0 %v3035_v56  ;;  %1448 = vmatmul.mubr.bf16.vlgmr.msra.gmra.mrb[32].mxu1 %v3035_v56  ;;  %v678_v56 = vpack.c.bf16 %v662_v3, %v662_v3 }
 0x123   : > { %2309 = vmatprep.mubr.msk.bf16.mxu0 %vm1196_vm2, %v3074_v39  ;;  %2313 = vmatprep.mubr.msk.bf16.mxu1 %vm1196_vm2, %v3074_v39  ;;  %v1500_v39 = vpop.permute.xlu1 %1499  ;;  %v3194_v60 = vpop.permute.xlu0 %1607 }
 0x127   : > { %v1505_v46 = vpop.permute.xlu1 %1504  ;;  %v3202_v6 = vpop.permute.xlu0 %1675 }
 0x12a   : > { %1323 = vmatmul.mubr.bf16.gmra.mrb[20].mxu0 %v3066_v34  ;;  %1456 = vmatmul.mubr.bf16.gmra.mrb[36].mxu1 %v3066_v34  ;;  %v677_v34 = vpack.c.bf16 %v661_v30, %v661_v30 }
 0x12b   : > { %2310 = vmatprep.mubr.msk.bf16.mxu0 %vm1196_vm2, %v3106_v12  ;;  %2314 = vmatprep.mubr.msk.bf16.mxu1 %vm1196_vm2, %v3106_v12  ;;  %v1515_v47 = vpop.permute.xlu1 %1514  ;;  %v3217_v17 = vpop.permute.xlu0 %1687 }
 0x12f   : > { %v3176_v48 = vpop.permute.xlu1 %1583  ;;  %v3262_v30 = vpop.permute.xlu0 %1695 }
 0x132   : > { %1333 = vmatmul.mubr.bf16.gmra.mrb[24].mxu0 %v3098_v7  ;;  %1464 = vmatmul.mubr.bf16.gmra.mrb[40].mxu1 %v3098_v7  ;;  %v1486_v7 = vld [vmem:[%s3781_s5] ss:$4 sm:$0x7] }
 0x133   : > { %2311 = vmatprep.mubr.msk.bf16.mxu0 %vm1196_vm2, %v678_v56  ;;  %2315 = vmatprep.mubr.msk.bf16.mxu1 %vm1196_vm2, %v678_v56  ;;  %v3178_v50 = vpop.permute.xlu1 %1591  ;;  %v1526_v9 = vrot.slane %v1486_v7, %v3006_v22  ;;  %v1530_v10 = vrot.slane %v1486_v7, %v3013_v25  ;;  %v1534_v11 = vrot.slane %v1486_v7, %v3008_v23 }
 0x134   : > { %v3296_v14 = vmul.f32 %v1614_v29, %v3178_v50 }
 0x135   : > { %v3221_v20 = vmul.f32 %v1526_v9, %v1500_v39  ;;  %v3223_v21 = vmul.f32 %v1530_v10, %v1500_v39  ;;  %v3225_v24 = vmul.f32 %v1534_v11, %v1500_v39  ;;  %v3229_v26 = vmul.f32 %v1526_v9, %v1490_v49 }
 0x136   : > { %v3231_v31 = vmul.f32 %v1530_v10, %v1490_v49  ;;  %v3233_v32 = vmul.f32 %v1534_v11, %v1490_v49  ;;  %v3239_v35 = vmul.f32 %v1526_v9, %v1505_v46  ;;  %v3241_v36 = vmul.f32 %v1530_v10, %v1505_v46 }
 0x137   : > { %v3180_v51 = vpop.permute.xlu1 %1595  ;;  %v3245_v40 = vmul.f32 %v1534_v11, %v1505_v46  ;;  %v3247_v41 = vmul.f32 %v1526_v9, %v1495_v28  ;;  %v3249_v42 = vmul.f32 %v1530_v10, %v1495_v28  ;;  %v3251_v43 = vmul.f32 %v1534_v11, %v1495_v28 }
 0x138   : > { %3790 = vst [vmem:[#allocation4_spill] sm:$0xff] %v3241_v36  ;;  %v3253_v44 = vmul.f32 %v1526_v9, %v1515_v47  ;;  %v3255_v61 = vmul.f32 %v1530_v10, %v1515_v47  ;;  %v3257_v3 = vmul.f32 %v1534_v11, %v1515_v47  ;;  %v3266_v39 = vmul.f32 %v1530_v10, %v1510_v52 }
 0x139   : > { %3791 = vst [vmem:[#allocation5_spill] sm:$0xff] %v3245_v40  ;;  %v3268_v46 = vmul.f32 %v1534_v11, %v1510_v52  ;;  %v3271_v49 = vmul.f32 %v1614_v29, %v3176_v48  ;;  %v3276_v47 = vmul.f32 %v1618_v37, %v3176_v48 }
 0x13a   : > { %1343 = vmatmul.mubr.bf16.gmra.mrb[32].mxu0 %v677_v34  ;;  %1472 = vmatmul.mubr.bf16.gmra.mrb[44].mxu1 %v677_v34  ;;  %3792 = vst [vmem:[#allocation6_spill] sm:$0xff] %v3253_v44  ;;  %3793 = vst [vmem:[#allocation7_spill] sm:$0xff] %v3255_v61  ;;  %v3264_v34 = vmul.f32 %v1526_v9, %v1510_v52  ;;  %v2317_v52 = vld [vmem:[%s3781_s5 + $0x2] ss:$4 sm:$0x7]  ;;  %v1764_v44 = vpop.permute.xlu0 %1763 }
 0x13b   : > { %v3182_v53 = vpop.permute.xlu1 %1603  ;;  %3794 = vst [vmem:[#allocation8_spill] sm:$0xff] %v3257_v3  ;;  %3796 = vst [vmem:[#allocation10_spill] sm:$0xff] %v3266_v39  ;;  %v3340_v3 = vmul.f32 %v1614_v29, %v3190_v58  ;;  %v3343_v39 = vmul.f32 %v1618_v37, %v3190_v58 }
 0x13c   : > { %3795 = vst [vmem:[#allocation9_spill] sm:$0xff] %v3264_v34  ;;  %3797 = vst [vmem:[#allocation11_spill] sm:$0xff] %v3268_v46  ;;  %v3337_v61 = vmul.f32 %v1622_v38, %v3182_v53  ;;  %v3346_v46 = vmul.f32 %v1622_v38, %v3190_v58  ;;  %v3351_v34 = vrot.slane %v779_v33, %v3013_v25 }
 0x13d   : > { %3808 = vst [vmem:[#allocation22_spill] sm:$0xff] %v3340_v3  ;;  %3809 = vst [vmem:[#allocation23_spill] sm:$0xff] %v3343_v39  ;;  %v3368_v3 = vmul.f32 %v1618_v37, %v3194_v60 }
 0x13e   : > { %3807 = vst [vmem:[#allocation21_spill] sm:$0xff] %v3337_v61  ;;  %3810 = vst [vmem:[#allocation24_spill] sm:$0xff] %v3346_v46 }
 0x13f   : > { %v3188_v57 = vpop.permute.xlu1 %1671  ;;  %3812 = vst [vmem:[#allocation26_spill] sm:$0xff] %v3368_v3  ;;  %v1776_v3 = vpop.permute.xlu0 %1775 }
 0x143   : > { %v3192_v59 = vpop.permute.xlu1 %1679 }
 0x147   : > { %v3196_v62 = vpop.permute.xlu1 %1683 }
 0x14b   : > { %v3207_v8 = vpop.permute.xlu1 %1691 }
 0x14f   : > { %v3219_v19 = vpop.permute.xlu1 %1759 }
 0x1d1   : > { %v2348_v63 = vpop.f32.mrb[16].mxu1 }
 0x1d2   : > { %v2349_v0 = vpop.f32.mrb[17].mxu1 }
 0x1d3   : > { %v3198_v1 = vadd.f32 %v2349_v0, %v2348_v63  ;;  %v2351_v2 = vpop.f32.mrb[18].mxu1  ;;  %v3273_v63 = vpop.permute.xlu1 %1767  ;;  %v3279_v0 = vmul.f32 %v1622_v38, %v3176_v48  ;;  %v3299_v48 = vmul.f32 %v1618_v37, %v3178_v50 }
 0x1d4   : > { %v2352_v4 = vpop.f32.mrb[19].mxu1 }
 0x1d5   : > { %v3200_v5 = vadd.f32 %v2352_v4, %v2351_v2  ;;  %v3282_v2 = vmul.f32 %v1526_v9, %v3184_v54  ;;  %3801 = vst [vmem:[#allocation15_spill] sm:$0xff] %v3299_v48 }
 0x1d7   : > { %3798 = vst [vmem:[#allocation12_spill] sm:$0xff] %v3282_v2  ;;  %v3327_v2 = vrot.slane %v779_v33, %v3006_v22  ;;  %v3371_v33 = vmul.f32 %v1622_v38, %v3194_v60 }
 0x1d9   : > { %v2354_v12 = vpop.f32.mrb[20].mxu1  ;;  %3813 = vst [vmem:[#allocation27_spill] sm:$0xff] %v3371_v33 }
 0x1da   : > { %v2355_v13 = vpop.f32.mrb[21].mxu1 }
 0x1db   : > { %v3215_v15 = vadd.f32 %v2355_v13, %v2354_v12  ;;  %v2357_v16 = vpop.f32.mrb[22].mxu1  ;;  %v3290_v12 = vmul.f32 %v1530_v10, %v3184_v54  ;;  %v3293_v13 = vmul.f32 %v1534_v11, %v3184_v54  ;;  %v3313_v54 = vmul.f32 %v1622_v38, %v3180_v51 }
 0x1dc   : > { %v2358_v18 = vpop.f32.mrb[23].mxu1  ;;  %v3316_v11 = vmul.f32 %v1614_v29, %v3186_v55 }
 0x1dd   : > { %v3227_v27 = vadd.f32 %v2358_v18, %v2357_v16  ;;  %3799 = vst [vmem:[#allocation13_spill] sm:$0xff] %v3290_v12  ;;  %3800 = vst [vmem:[#allocation14_spill] sm:$0xff] %v3293_v13  ;;  %v3302_v16 = vmul.f32 %v1622_v38, %v3178_v50  ;;  %v3305_v18 = vmul.f32 %v1614_v29, %v3180_v51 }
 0x1de   : > { %3804 = vst [vmem:[#allocation18_spill] sm:$0xff] %v3313_v54  ;;  %v1706_v12 = vrot.slane %v2317_v52, %v3013_v25  ;;  %v3321_v50 = vmul.f32 %v1618_v37, %v3186_v55  ;;  %v3324_v13 = vmul.f32 %v1622_v38, %v3186_v55  ;;  %v1772_v55 = vpop.permute.xlu1 %1771 }
 0x1df   : > { %3802 = vst [vmem:[#allocation16_spill] sm:$0xff] %v3305_v18 }
 0x1e0   : > { %v3363_v39 = vmul.f32 %v1706_v12, %v3188_v57  ;;  %v3382_v18 = vmul.f32 %v1706_v12, %v3192_v59 }
 0x1e1   : > { %v2360_v56 = vpop.f32.mrb[24].mxu1 }
 0x1e2   : > { %v2361_v28 = vpop.f32.mrb[25].mxu1  ;;  %3814 = vst [vmem:[#allocation28_spill] sm:$0xff] %v3382_v18 }
 0x1e3   : > { %v3284_v4 = vadd.f32 %v2361_v28, %v2360_v56  ;;  %v2363_v7 = vpop.f32.mrb[26].mxu1  ;;  %v3308_v56 = vmul.f32 %v1618_v37, %v3180_v51  ;;  %v1702_v28 = vrot.slane %v2317_v52, %v3006_v22  ;;  %v3331_v51 = vmul.f32 %v1614_v29, %v3182_v53 }
 0x1e4   : > { %v2364_v9 = vpop.f32.mrb[27].mxu1 }
 0x1e5   : > { %3803 = vst [vmem:[#allocation17_spill] sm:$0xff] %v3308_v56  ;;  %v3310_v10 = vadd.f32 %v2364_v9, %v2363_v7  ;;  %v1710_v7 = vrot.slane %v2317_v52, %v3008_v23  ;;  %3805 = vst [vmem:[#allocation19_spill] sm:$0xff] %v3331_v51  ;;  %v3334_v9 = vmul.f32 %v1618_v37, %v3182_v53 }
 0x1e6   : > { %v3354_v53 = vmul.f32 %v1614_v29, %v3194_v60  ;;  %v3360_v61 = vmul.f32 %v1702_v28, %v3188_v57  ;;  %v3379_v36 = vmul.f32 %v1702_v28, %v3192_v59  ;;  %v3388_v60 = vmul.f32 %v1702_v28, %v3202_v6 }
 0x1e7   : > { %3806 = vst [vmem:[#allocation20_spill] sm:$0xff] %v3334_v9  ;;  %v2318_v9 = vld [vmem:[%s3781_s5 + $0x3] ss:$4 sm:$0x7]  ;;  %v3374_v29 = vmul.f32 %v1710_v7, %v3188_v57  ;;  %v3385_v37 = vmul.f32 %v1710_v7, %v3192_v59  ;;  %v3391_v57 = vmul.f32 %v1706_v12, %v3202_v6  ;;  %v3405_v59 = vmul.f32 %v1706_v12, %v3196_v62 }
 0x1e8   : > { %3811 = vst [vmem:[#allocation25_spill] sm:$0xff] %v3354_v53  ;;  %v1790_v38 = vrot.slane %v2318_v9, %v3006_v22  ;;  %v3417_v33 = vmul.f32 %v1710_v7, %v3217_v17 }
 0x1e9   : > { %v3348_v52 = vpop.f32.mrb[28].mxu0  ;;  %v2366_v51 = vpop.f32.mrb[28].mxu1  ;;  %3817 = vst [vmem:[#allocation31_spill] sm:$0xff] %v3405_v59  ;;  %v3426_v59 = vmul.f32 %v1710_v7, %v3207_v8 }
 0x1ea   : > { %v3365_v58 = vpop.f32.mrb[29].mxu0  ;;  %v2367_v46 = vpop.f32.mrb[29].mxu1  ;;  %3821 = vst [vmem:[#allocation35_spill] sm:$0xff] %v3417_v33  ;;  %v3473_v33 = vmul.f32 %v1790_v38, %v1772_v55 }
 0x1eb   : > { %v3376_v53 = vadd.f32 %v2367_v46, %v2366_v51  ;;  %v1277_v56 = vpop.f32.mrb[30].mxu0  ;;  %v2369_v54 = vpop.f32.mrb[30].mxu1  ;;  %v3395_v46 = vmul.f32 %v1710_v7, %v3202_v6  ;;  %v3411_v51 = vmul.f32 %v1702_v28, %v3217_v17  ;;  %v3414_v6 = vmul.f32 %v1706_v12, %v3217_v17  ;;  %3824 = vst [vmem:[#allocation38_spill] sm:$0xff] %v3426_v59 }
 0x1ec   : > { %v1278_v48 = vpop.f32.mrb[31].mxu0  ;;  %v2370_v40 = vpop.f32.mrb[31].mxu1  ;;  %v3398_v56 = vmul.f32 %v1702_v28, %v3196_v62  ;;  %v3408_v54 = vmul.f32 %v1710_v7, %v3196_v62  ;;  %v1865_v62 = vld [vmem:[%s3783_s7] sm:$0x7]  ;;  %v3438_v17 = vmul.f32 %v1710_v7, %v3262_v30  ;;  %v3450_v59 = vmul.f32 %v1790_v38, %v1764_v44  ;;  %3832 = vst [vmem:[#allocation46_spill] sm:$0xff] %v3473_v33 }
 0x1ed   : > { %v1794_v48 = vrot.slane %v2318_v9, %v3013_v25  ;;  %v3402_v40 = vrot.slane %v2318_v9, %v3008_v23  ;;  %3819 = vst [vmem:[#allocation33_spill] sm:$0xff] %v3411_v51  ;;  %3820 = vst [vmem:[#allocation34_spill] sm:$0xff] %v3414_v6  ;;  %v3423_v9 = vmul.f32 %v1706_v12, %v3207_v8  ;;  %v1780_v7 = vpop.permute.xlu1 %1779 }
 0x1ee   : > { %3815 = vst [vmem:[#allocation29_spill] sm:$0xff] %v3398_v56  ;;  %3818 = vst [vmem:[#allocation32_spill] sm:$0xff] %v3408_v54  ;;  %v3420_v56 = vmul.f32 %v1702_v28, %v3207_v8  ;;  %v3432_v51 = vmul.f32 %v1702_v28, %v3262_v30  ;;  %v3435_v6 = vmul.f32 %v1706_v12, %v3262_v30 }
 0x1ef   : > { %3816 = vst [vmem:[#allocation30_spill] sm:$0xff] %v3402_v40  ;;  %3823 = vst [vmem:[#allocation37_spill] sm:$0xff] %v3423_v9  ;;  %v3444_v9 = vmul.f32 %v1794_v48, %v3219_v19  ;;  %v3448_v8 = vmul.f32 %v3402_v40, %v3219_v19  ;;  %v3453_v28 = vmul.f32 %v3402_v40, %v1764_v44 }
 0x1f0   : > { %3822 = vst [vmem:[#allocation36_spill] sm:$0xff] %v3420_v56  ;;  %3825 = vst [vmem:[#allocation39_spill] sm:$0xff] %v3432_v51  ;;  %v3441_v56 = vmul.f32 %v1790_v38, %v3219_v19  ;;  %v3455_v12 = vmul.f32 %v1794_v48, %v1764_v44  ;;  %v3458_v30 = vmul.f32 %v1790_v38, %v3273_v63 }
 0x1f1   : > { %3826 = vst [vmem:[#allocation40_spill] sm:$0xff] %v3435_v6  ;;  %3827 = vst [vmem:[#allocation41_spill] sm:$0xff] %v3438_v17  ;;  %v3461_v6 = vrot.slane %v1865_v62, %v3006_v22  ;;  %v3464_v17 = vrot.slane %v1865_v62, %v3008_v23  ;;  %v3467_v19 = vmul.f32 %v1794_v48, %v3273_v63 }
 0x1f2   : > { %3828 = vst [vmem:[#allocation42_spill] sm:$0xff] %v3458_v30  ;;  %v3471_v51 = vmul.f32 %v3402_v40, %v3273_v63  ;;  %v3476_v44 = vrot.slane %v1865_v62, %v3013_v25  ;;  %v1386_v54 = vadd.f32 %v3198_v1, %v3260_v45  ;;  %v3480_v22 = vmul.f32 %v1794_v48, %v1772_v55 }
 0x1f3   : > { %3829 = vst [vmem:[#allocation43_spill] sm:$0xff] %v3464_v17  ;;  %3830 = vst [vmem:[#allocation44_spill] sm:$0xff] %v3467_v19  ;;  %v3483_v23 = vmul.f32 %v3402_v40, %v1772_v55  ;;  %v3485_v17 = vmul.f32 %v1790_v38, %v1776_v3  ;;  %v3487_v19 = vpop.permute.xlu0 %1783  ;;  %v3492_v33 = vmul.f32 %v3402_v40, %v1776_v3 }
 0x1f4   : > { %3831 = vst [vmem:[#allocation45_spill] sm:$0xff] %v3471_v51  ;;  %3833 = vst [vmem:[#allocation47_spill] sm:$0xff] %v3476_v44  ;;  %v3489_v51 = vmul.f32 %v1794_v48, %v1776_v3  ;;  %v3494_v25 = vmul.f32 %v1790_v38, %v1780_v7  ;;  %v3496_v62 = vmul.f32 %v1794_v48, %v1780_v7 }
 0x1f5   : > { %3834 = vst [vmem:[#allocation48_spill] sm:$0xff] %v3480_v22  ;;  %3835 = vst [vmem:[#allocation49_spill] sm:$0xff] %v3483_v23  ;;  %v1314_v18 = vpop.f32.mrb[16].mxu0  ;;  %v1449_v63 = vpop.f32.mrb[32].mxu1  ;;  %v3502_v30 = vmul.f32 %v3402_v40, %v1780_v7 }
 0x1f6   : > { %3836 = vst [vmem:[#allocation50_spill] sm:$0xff] %v3485_v17  ;;  %3837 = vst [vmem:[#allocation51_spill] sm:$0xff] %v3489_v51  ;;  %v2372_v1 = vadd.f32 %v1314_v18, %v3327_v2  ;;  %v1450_v22 = vadd.f32 %v1449_v63, %v1386_v54  ;;  %v1316_v55 = vpop.f32.mrb[17].mxu0  ;;  %v1451_v23 = vpop.f32.mrb[33].mxu1  ;;  %v1389_v17 = vadd.f32 %v3200_v5, %v3260_v45 }
 0x1f7   : > { %3838 = vst [vmem:[#allocation52_spill] sm:$0xff] %v3492_v33  ;;  %3839 = vst [vmem:[#allocation53_spill] sm:$0xff] %v3496_v62  ;;  %v2373_v51 = vadd.f32 %v1316_v55, %v3351_v34  ;;  %v1318_v44 = vpop.f32.mrb[18].mxu0  ;;  %v1452_v3 = vpop.f32.mrb[34].mxu1  ;;  %v1394_v33 = vadd.f32 %v3215_v15, %v3260_v45  ;;  %v3508_v62 = vmul.f32 %v1790_v38, %v3487_v19 }
 0x1f8   : > { %3840 = vst [vmem:[#allocation54_spill] sm:$0xff] %v3502_v30  ;;  %v3511_v18 = vmul.f32 %v1794_v48, %v3487_v19  ;;  %v1559_v54 = vadd.f32 %v2372_v1, %v3229_v26  ;;  %v1561_v5 = vadd.f32 %v3233_v32, %v1450_v22  ;;  %v2374_v7 = vadd.f32 %v1318_v44, %v3327_v2  ;;  %v1320_v63 = vpop.f32.mrb[19].mxu0  ;;  %v1454_v55 = vpop.f32.mrb[35].mxu1 }
 0x1f9   : > { %v1453_v23 = vadd.f32 %v1452_v3, %v1389_v17  ;;  %v1560_v40 = vadd.f32 %v2373_v51, %v3231_v31  ;;  %v2375_v30 = vadd.f32 %v1320_v63, %v3351_v34  ;;  %v1397_v15 = vadd.f32 %v3227_v27, %v3260_v45 }
 0x1fa   : > { %v3522_v38 = vadd.f32 %v3284_v4, %v3260_v45  ;;  %v1647_v26 = vadd.f32 %v3271_v49, %v1559_v54  ;;  %v1649_v32 = vadd.f32 %v3279_v0, %v1561_v5  ;;  %v1562_v48 = vadd.f32 %v2374_v7, %v3247_v41 }
 0x1fb   : > { %v1564_v17 = vadd.f32 %v3251_v43, %v1453_v23  ;;  %v3530_v31 = vadd.f32 %v3348_v52, %v3327_v2  ;;  %v1648_v51 = vadd.f32 %v3276_v47, %v1560_v40  ;;  %v1563_v27 = vadd.f32 %v2375_v30, %v3249_v42 }
 0x1fc   : > { %v3536_v4 = vadd.f32 %v3310_v10, %v3260_v45  ;;  %v1735_v49 = vadd.f32 %v3360_v61, %v1647_v26  ;;  %v1737_v0 = vadd.f32 %v3374_v29, %v1649_v32  ;;  %v1650_v41 = vadd.f32 %v3316_v11, %v1562_v48 }
 0x1fd   : > { %v1652_v43 = vadd.f32 %v3324_v13, %v1564_v17  ;;  %v3544_v52 = vadd.f32 %v3365_v58, %v3351_v34  ;;  %v1736_v47 = vadd.f32 %v3363_v39, %v1648_v51  ;;  %v1651_v42 = vadd.f32 %v3321_v50, %v1563_v27  ;;  %v1324_v40 = vpop.f32.mrb[20].mxu0  ;;  %v1457_v30 = vpop.f32.mrb[36].mxu1  ;;  %v3841_v27 = vld [vmem:[#allocation5_spill] sm:$0xff] }
 0x1fe   : > { %v3550_v10 = vadd.f32 %v3376_v53, %v3260_v45  ;;  %v1738_v61 = vadd.f32 %v3388_v60, %v1650_v41  ;;  %v1823_v13 = vadd.f32 %v3441_v56, %v1735_v49  ;;  %v3556_v29 = vadd.f32 %v3448_v8, %v1737_v0  ;;  %v1326_v58 = vpop.f32.mrb[21].mxu0  ;;  %v1459_v44 = vpop.f32.mrb[37].mxu1 }
 0x1ff   : > { %v1740_v11 = vadd.f32 %v3395_v46, %v1652_v43  ;;  %v1739_v39 = vadd.f32 %v3391_v57, %v1651_v42  ;;  %v1824_v50 = vadd.f32 %v3444_v9, %v1736_v47  ;;  %v2376_v22 = vadd.f32 %v1324_v40, %v3327_v2  ;;  %v1328_v45 = vpop.f32.mrb[22].mxu0  ;;  %v1460_v53 = vpop.f32.mrb[38].mxu1 }
 0x200   : > { %v1458_v1 = vadd.f32 %v1457_v30, %v1394_v33  ;;  %v1844_v3 = vmax.f32 %v1823_v13, 0.0  ;;  %v1846_v60 = vmax.f32 %v3556_v29, 0.0  ;;  %v3563_v46 = vadd.f32 %v3450_v59, %v1738_v61  ;;  %v1330_v8 = vpop.f32.mrb[23].mxu0  ;;  %v1462_v54 = vpop.f32.mrb[39].mxu1 }
 0x201   : > { %v3566_v56 = vadd.f32 %v3453_v28, %v1740_v11  ;;  %v1845_v5 = vmax.f32 %v1824_v50, 0.0  ;;  %v3569_v57 = vadd.f32 %v3455_v12, %v1739_v39  ;;  %v1565_v9 = vadd.f32 %v2376_v22, %v3221_v20 }
 0x202   : > { %v1567_v33 = vadd.f32 %v3225_v24, %v1458_v1  ;;  %v1847_v7 = vmax.f32 %v3563_v46, 0.0  ;;  %v2377_v59 = vadd.f32 %v1326_v58, %v3351_v34  ;;  %v2378_v63 = vadd.f32 %v1328_v45, %v3327_v2  ;;  %v3848_v58 = vld [vmem:[#allocation45_spill] sm:$0xff]  ;;  %v3849_v1 = vld [vmem:[#allocation28_spill] sm:$0xff] }
 0x203   : > { %v1849_v23 = vmax.f32 %v3566_v56, 0.0  ;;  %v1848_v28 = vmax.f32 %v3569_v57, 0.0  ;;  %v1653_v55 = vadd.f32 %v3296_v14, %v1565_v9  ;;  %v1461_v12 = vadd.f32 %v1460_v53, %v1397_v15  ;;  %v3842_v14 = vld [vmem:[#allocation47_spill] sm:$0xff]  ;;  %v3850_v53 = vld [vmem:[#allocation29_spill] sm:$0xff] }
 0x204   : > { %v1655_v26 = vadd.f32 %v3302_v16, %v1567_v33  ;;  %v1566_v32 = vadd.f32 %v2377_v59, %v3223_v21  ;;  %v1568_v20 = vadd.f32 %v2378_v63, %v3239_v35  ;;  %v2379_v24 = vadd.f32 %v1330_v8, %v3351_v34  ;;  %v3843_v16 = vld [vmem:[#allocation15_spill] sm:$0xff]  ;;  %v3844_v21 = vld [vmem:[#allocation16_spill] sm:$0xff]  ;;  %v3851_v8 = vld [vmem:[#allocation17_spill] sm:$0xff] }
 0x205   : > { %v1882_v48 = vmul.f32 %v3461_v6, %v1844_v3  ;;  %v1741_v17 = vadd.f32 %v3379_v36, %v1653_v55  ;;  %v1570_v49 = vadd.f32 %v3841_v27, %v1461_v12  ;;  %v1334_v0 = vpop.f32.mrb[24].mxu0  ;;  %v1465_v41 = vpop.f32.mrb[40].mxu1  ;;  %v1883_v43 = vmul.f32 %v3842_v14, %v1845_v5  ;;  %v3845_v35 = vld [vmem:[#allocation4_spill] sm:$0xff]  ;;  %v3846_v36 = vld [vmem:[#allocation18_spill] sm:$0xff]  ;;  %v3852_v5 = vld [vmem:[#allocation9_spill] sm:$0xff] }
 0x206   : > { %v1743_v51 = vadd.f32 %v3385_v37, %v1655_v26  ;;  %v1654_v15 = vadd.f32 %v3843_v16, %v1566_v32  ;;  %v1656_v47 = vadd.f32 %v3844_v21, %v1568_v20  ;;  %v1569_v42 = vadd.f32 %v2379_v24, %v3845_v35  ;;  %v1336_v30 = vpop.f32.mrb[25].mxu0  ;;  %v1467_v61 = vpop.f32.mrb[41].mxu1  ;;  %v3847_v37 = vld [vmem:[#allocation42_spill] sm:$0xff]  ;;  %v3853_v63 = vld [vmem:[#allocation32_spill] sm:$0xff]  ;;  %v3854_v32 = vld [vmem:[#allocation11_spill] sm:$0xff] }
 0x207   : > { %v2380_v40 = vadd.f32 %v1334_v0, %v3327_v2  ;;  %v1658_v11 = vadd.f32 %v3846_v36, %v1570_v49  ;;  %v3594_v13 = vadd.f32 %v3847_v37, %v1741_v17  ;;  %v1466_v39 = vadd.f32 %v1465_v41, %v3522_v38  ;;  %v1338_v50 = vpop.f32.mrb[26].mxu0  ;;  %v1468_v22 = vpop.f32.mrb[42].mxu1  ;;  %v3855_v20 = vld [vmem:[#allocation44_spill] sm:$0xff]  ;;  %v3856_v17 = vld [vmem:[#allocation31_spill] sm:$0xff]  ;;  %v3857_v27 = vld [vmem:[#allocation46_spill] sm:$0xff] }
 0x208   : > { %v3597_v44 = vadd.f32 %v3848_v58, %v1743_v51  ;;  %v1742_v45 = vadd.f32 %v3849_v1, %v1654_v15  ;;  %v1744_v3 = vadd.f32 %v3850_v53, %v1656_v47  ;;  %v1657_v54 = vadd.f32 %v3851_v8, %v1569_v42  ;;  %v1340_v33 = vpop.f32.mrb[27].mxu0  ;;  %v1470_v59 = vpop.f32.mrb[43].mxu1  ;;  %v3858_v0 = vld [vmem:[#allocation22_spill] sm:$0xff]  ;;  %v3859_v16 = vld [vmem:[#allocation49_spill] sm:$0xff]  ;;  %v3860_v21 = vld [vmem:[#allocation24_spill] sm:$0xff] }
 0x209   : > { %v1571_v9 = vadd.f32 %v2380_v40, %v3852_v5  ;;  %v1746_v55 = vadd.f32 %v3853_v63, %v1658_v11  ;;  %v1850_v26 = vmax.f32 %v3594_v13, 0.0  ;;  %v1573_v38 = vadd.f32 %v3854_v32, %v1466_v39  ;;  %v3861_v61 = vld [vmem:[#allocation48_spill] sm:$0xff]  ;;  %v3862_v37 = vld [vmem:[#allocation33_spill] sm:$0xff]  ;;  %v3863_v39 = vld [vmem:[#allocation35_spill] sm:$0xff] }
 0x20a   : > { %v1852_v12 = vmax.f32 %v3597_v44, 0.0  ;;  %v1830_v24 = vadd.f32 %v3855_v20, %v1742_v45  ;;  %v1745_v51 = vadd.f32 %v3856_v17, %v1657_v54  ;;  %v3611_v49 = vadd.f32 %v3857_v27, %v1744_v3  ;;  %v3864_v45 = vld [vmem:[#allocation10_spill] sm:$0xff]  ;;  %v3867_v32 = vld [vmem:[#allocation23_spill] sm:$0xff] }
 0x20b   : > { %v1659_v41 = vadd.f32 %v3858_v0, %v1571_v9  ;;  %v3615_v15 = vadd.f32 %v3859_v16, %v1746_v55  ;;  %v1661_v47 = vadd.f32 %v3860_v21, %v1573_v38  ;;  %v2381_v35 = vadd.f32 %v1336_v30, %v3351_v34  ;;  %v3865_v3 = vld [vmem:[#allocation6_spill] sm:$0xff]  ;;  %v3866_v9 = vld [vmem:[#allocation43_spill] sm:$0xff]  ;;  %v3873_v21 = vld [vmem:[#allocation21_spill] sm:$0xff] }
 0x20c   : > { %v2382_v42 = vadd.f32 %v1338_v50, %v3327_v2  ;;  %v1851_v40 = vmax.f32 %v1830_v24, 0.0  ;;  %v1833_v36 = vadd.f32 %v3861_v61, %v1745_v51  ;;  %v1853_v11 = vmax.f32 %v3611_v49, 0.0  ;;  %v3868_v20 = vld [vmem:[#allocation19_spill] sm:$0xff]  ;;  %v3871_v16 = vld [vmem:[#allocation34_spill] sm:$0xff] }
 0x20d   : > { %v3623_v13 = vadd.f32 %v3862_v37, %v1659_v41  ;;  %v1855_v58 = vmax.f32 %v3615_v15, 0.0  ;;  %v3627_v1 = vadd.f32 %v3863_v39, %v1661_v47  ;;  %v1572_v53 = vadd.f32 %v2381_v35, %v3864_v45  ;;  %v1344_v30 = vpop.f32.mrb[32].mxu0  ;;  %v1473_v54 = vpop.f32.mrb[44].mxu1  ;;  %v3874_v35 = vld [vmem:[#allocation20_spill] sm:$0xff]  ;;  %v3875_v45 = vld [vmem:[#allocation38_spill] sm:$0xff] }
 0x20e   : > { %v1574_v8 = vadd.f32 %v2382_v42, %v3865_v3  ;;  %v1854_v2 = vmax.f32 %v1833_v36, 0.0  ;;  %v1469_v50 = vadd.f32 %v1468_v22, %v3536_v4  ;;  %v2383_v5 = vadd.f32 %v1340_v33, %v3351_v34  ;;  %v1346_v63 = vpop.f32.mrb[33].mxu0  ;;  %v1475_v55 = vpop.f32.mrb[45].mxu1  ;;  %v3869_v4 = vld [vmem:[#allocation8_spill] sm:$0xff]  ;;  %v3870_v34 = vld [vmem:[#allocation7_spill] sm:$0xff] }
 0x20f   : > { %v1884_v59 = vmul.f32 %v3866_v9, %v1846_v60  ;;  %v1660_v38 = vadd.f32 %v3867_v32, %v1572_v53  ;;  %v1903_v17 = vadd.f32 %v1883_v43, %v1882_v48  ;;  %v1885_v51 = vmul.f32 %v3461_v6, %v1847_v7  ;;  %v1348_v27 = vpop.f32.mrb[34].mxu0  ;;  %v1476_v49 = vpop.f32.mrb[46].mxu1  ;;  %v3872_v43 = vld [vmem:[#allocation36_spill] sm:$0xff]  ;;  %v3876_v53 = vld [vmem:[#allocation37_spill] sm:$0xff]  ;;  %v3880_v32 = vld [vmem:[#allocation54_spill] sm:$0xff] }
 0x210   : > { %v1662_v24 = vadd.f32 %v3868_v20, %v1574_v8  ;;  %v1576_v22 = vadd.f32 %v3869_v4, %v1469_v50  ;;  %v1575_v33 = vadd.f32 %v2383_v5, %v3870_v34  ;;  %v1886_v60 = vmul.f32 %v3842_v14, %v1848_v28  ;;  %v1349_v0 = vpop.f32.mrb[35].mxu0  ;;  %v1477_v41 = vpop.f32.mrb[47].mxu1  ;;  %v3877_v8 = vld [vmem:[#allocation12_spill] sm:$0xff]  ;;  %v3882_v20 = vld [vmem:[#allocation27_spill] sm:$0xff] }
 0x211   : > { %v1905_v29 = vsel %vm1904_vm3, %v1884_v59, 0.0  ;;  %v1748_v48 = vadd.f32 %v3871_v16, %v1660_v38  ;;  %v1887_v7 = vmul.f32 %v3866_v9, %v1849_v23  ;;  %v1345_v57 = vadd.f32 %v1344_v30, %v3530_v31  ;;  %v3878_v59 = vld [vmem:[#allocation14_spill] sm:$0xff]  ;;  %v3879_v31 = vld [vmem:[#allocation13_spill] sm:$0xff]  ;;  %v3884_v4 = vld [vmem:[#allocation39_spill] sm:$0xff] }
 0x212   : > { %v1750_v46 = vadd.f32 %v3872_v43, %v1662_v24  ;;  %v1906_v15 = vadd.f32 %v1905_v29, %v1903_v17  ;;  %v1664_v47 = vadd.f32 %v3873_v21, %v1576_v22  ;;  %v1663_v42 = vadd.f32 %v3874_v35, %v1575_v33  ;;  %v3883_v17 = vld [vmem:[#allocation26_spill] sm:$0xff]  ;;  %v3885_v29 = vld [vmem:[#allocation41_spill] sm:$0xff] }
 0x213   : > { %v1909_v61 = vadd.f32 %v1886_v60, %v1885_v51  ;;  %v1910_v36 = vsel %vm1904_vm3, %v1887_v7, 0.0  ;;  %v1474_v37 = vadd.f32 %v1473_v54, %v3550_v10  ;;  %v1347_v39 = vadd.f32 %v1346_v63, %v3544_v52  ;;  %v3881_v10 = vld [vmem:[#allocation25_spill] sm:$0xff]  ;;  %v3886_v60 = vld [vmem:[#allocation40_spill] sm:$0xff]  ;;  %v3887_v16 = vld [vmem:[#allocation50_spill] sm:$0xff] }
 0x214   : > { %v1838_v28 = vadd.f32 %v3494_v25, %v1750_v46  ;;  %1907 = vadd.xlane.f32.xlu1 %v1906_v15  ;;  %v1752_v56 = vadd.f32 %v3875_v45, %v1664_v47  ;;  %v1751_v23 = vadd.f32 %v3876_v53, %v1663_v42  ;;  %v1577_v50 = vadd.f32 %v3877_v8, %v1345_v57  ;;  %v3890_v7 = vld [vmem:[#allocation30_spill] sm:$0xff]  ;;  %v3891_v35 = vld [vmem:[#allocation53_spill] sm:$0xff] }
 0x215   : > { %v1911_v3 = vadd.f32 %v1910_v36, %v1909_v61  ;;  %v1579_v55 = vadd.f32 %v3878_v59, %v1474_v37  ;;  %v1578_v30 = vadd.f32 %v3879_v31, %v1347_v39  ;;  %v1888_v25 = vmul.f32 %v3461_v6, %v1850_v26 }
 0x216   : > { %v1859_v5 = vmax.f32 %v1838_v28, 0.0  ;;  %v1840_v38 = vadd.f32 %v3880_v32, %v1752_v56  ;;  %v1665_v54 = vadd.f32 %v3881_v10, %v1577_v50  ;;  %v1889_v52 = vmul.f32 %v3842_v14, %v1851_v40 }
 0x217   : > { %1912 = vadd.xlane.f32.xlu0 %v1911_v3  ;;  %v1890_v63 = vmul.f32 %v3866_v9, %v1852_v12  ;;  %v1667_v24 = vadd.f32 %v3882_v20, %v1579_v55  ;;  %v1666_v51 = vadd.f32 %v3883_v17, %v1578_v30  ;;  %v1891_v27 = vmul.f32 %v3461_v6, %v1853_v11  ;;  %v3888_v11 = vld [vmem:[#allocation51_spill] sm:$0xff] }
 0x218   : > { %v1892_v49 = vmul.f32 %v3842_v14, %v1854_v2  ;;  %v1861_v26 = vmax.f32 %v1840_v38, 0.0  ;;  %v1753_v22 = vadd.f32 %v3884_v4, %v1665_v54  ;;  %v1914_v34 = vadd.f32 %v1889_v52, %v1888_v25  ;;  %v3889_v2 = vld [vmem:[#allocation52_spill] sm:$0xff] }
 0x219   : > { %v1915_v33 = vsel %vm1904_vm3, %v1890_v63, 0.0  ;;  %v1755_v40 = vadd.f32 %v3885_v29, %v1667_v24  ;;  %v1754_v44 = vadd.f32 %v3886_v60, %v1666_v51  ;;  %v1893_v12 = vmul.f32 %v3866_v9, %v1855_v58 }
 0x21a   : > { %v1919_v0 = vadd.f32 %v1892_v49, %v1891_v27  ;;  %v1916_v41 = vadd.f32 %v1915_v33, %v1914_v34  ;;  %v1835_v43 = vadd.f32 %v3887_v16, %v3623_v13  ;;  %v1836_v46 = vadd.f32 %v3888_v11, %v1748_v48 }
 0x21b   : > { %v1837_v15 = vadd.f32 %v3889_v2, %v3627_v1  ;;  %v1822_v21 = vmul.f32 %v3890_v7, %v3487_v19  ;;  %v1920_v47 = vsel %vm1904_vm3, %v1893_v12, 0.0  ;;  %v1839_v42 = vadd.f32 %v3891_v35, %v1751_v23 }
 0x21c   : > { %v1897_v61 = vmul.f32 %v3461_v6, %v1859_v5  ;;  %1917 = vadd.xlane.f32.xlu0 %v1916_v41  ;;  %v1921_v58 = vadd.f32 %v1920_v47, %v1919_v0  ;;  %v1856_v57 = vmax.f32 %v1835_v43, 0.0  ;;  %v1857_v28 = vmax.f32 %v1836_v46, 0.0 }
 0x21d   : > { %v1858_v36 = vmax.f32 %v1837_v15, 0.0  ;;  %v1860_v13 = vmax.f32 %v1839_v42, 0.0  ;;  %v1899_v48 = vmul.f32 %v3866_v9, %v1861_v26  ;;  %v1841_v37 = vadd.f32 %v3508_v62, %v1753_v22 }
 0x21e   : > { %v1842_v1 = vadd.f32 %v3511_v18, %v1754_v44  ;;  %1922 = vadd.xlane.f32.xlu1 %v1921_v58  ;;  %v1894_v19 = vmul.f32 %v3461_v6, %v1856_v57  ;;  %v1895_v39 = vmul.f32 %v3842_v14, %v1857_v28  ;;  %v1843_v56 = vadd.f32 %v1822_v21, %v1755_v40 }
 0x21f   : > { %v1896_v45 = vmul.f32 %v3866_v9, %v1858_v36  ;;  %v1898_v53 = vmul.f32 %v3842_v14, %v1860_v13  ;;  %v1862_v23 = vmax.f32 %v1841_v37, 0.0  ;;  %v1930_v31 = vsel %vm1904_vm3, %v1899_v48, 0.0 }
 0x220   : > { %v1863_v3 = vmax.f32 %v1842_v1, 0.0  ;;  %v1924_v8 = vadd.f32 %v1895_v39, %v1894_v19  ;;  %v1864_v50 = vmax.f32 %v1843_v56, 0.0  ;;  %v1940_v54 = vstv %s1939_s26 }
 0x221   : > { %v1925_v5 = vsel %vm1904_vm3, %v1896_v45, 0.0  ;;  %v1929_v62 = vadd.f32 %v1898_v53, %v1897_v61  ;;  %v1900_v18 = vmul.f32 %v3461_v6, %v1862_v23 }
 0x222   : > { %v1901_v59 = vmul.f32 %v3842_v14, %v1863_v3  ;;  %v1926_v55 = vadd.f32 %v1925_v5, %v1924_v8  ;;  %v1902_v30 = vmul.f32 %v3866_v9, %v1864_v50 }
 0x223   : > { %v1931_v25 = vadd.f32 %v1930_v31, %v1929_v62 }
 0x224   : > { %v1934_v32 = vadd.f32 %v1901_v59, %v1900_v18  ;;  %1927 = vadd.xlane.f32.xlu0 %v1926_v55  ;;  %v1935_v38 = vsel %vm1904_vm3, %v1902_v30, 0.0 }
 0x225   : > { %1932 = vadd.xlane.f32.xlu1 %v1931_v25 }
 0x226   : > { %v1936_v10 = vadd.f32 %v1935_v38, %v1934_v32 }
 0x228   : > { %1937 = vadd.xlane.f32.xlu0 %v1936_v10 }
 0x2a1   : > { %v1908_v6 = vpop.xlane.xlu1 %1907 }
 0x2a2   : > { %v1941_v14 = vadd.f32 %v1940_v54, %v1908_v6 }
 0x2a4   : > { %1949 = vst.msk [vmem:[%s3704_s28] sm:$0xff] %vm1948_vm4, %v1941_v14  ;;  %v1913_v9 = vpop.xlane.xlu0 %1912 }
 0x2a5   : > { %v1942_v52 = vadd.f32 %v1940_v54, %v1913_v9 }
 0x2a7   : > { %1950 = vst.msk [vmem:[%s3704_s28 + $0x8] sm:$0xff] %vm1948_vm4, %v1942_v52 }
 0x2a9   : > { %v1918_v63 = vpop.xlane.xlu0 %1917 }
 0x2aa   : > { %v1943_v20 = vadd.f32 %v1940_v54, %v1918_v63 }
 0x2ab   : > { %v1923_v24 = vpop.xlane.xlu1 %1922 }
 0x2ac   : > { %1951 = vst.msk [vmem:[%s3704_s28 + $0x10] sm:$0xff] %vm1948_vm4, %v1943_v20  ;;  %v1944_v17 = vadd.f32 %v1940_v54, %v1923_v24 }
 0x2ae   : > { %1952 = vst.msk [vmem:[%s3704_s28 + $0x18] sm:$0xff] %vm1948_vm4, %v1944_v17 }
 0x2b1   : > { %v1928_v51 = vpop.xlane.xlu0 %1927 }
 0x2b2   : > { %v1945_v27 = vadd.f32 %v1940_v54, %v1928_v51  ;;  %v1933_v49 = vpop.xlane.xlu1 %1932  ;;  %1962 = sbr.rel (!%p2782_p4) target bundleno = 758 (0x2f6), region = 60 }
 0x2b3   : > { %v1946_v26 = vadd.f32 %v1940_v54, %v1933_v49 }
 0x2b4   : > { %1953 = vst.msk [vmem:[%s3704_s28 + $0x20] sm:$0xff] %vm1948_vm4, %v1945_v27 }
 0x2b5   : > { %1954 = vst.msk [vmem:[%s3704_s28 + $0x28] sm:$0xff] %vm1948_vm4, %v1946_v26  ;;  %v1938_v4 = vpop.xlane.xlu0 %1937 }
 0x2b6   : > { %v1947_v22 = vadd.f32 %v1940_v54, %v1938_v4 }
 0x2b8   : > { %1955 = vst.msk [vmem:[%s3704_s28 + $0x30] sm:$0xff] %vm1948_vm4, %v1947_v22 }
 0x2b9   : > { %s3899_s11 = smov (!%p1965_p8, %s1964_s11), 7 }
 0x2ba   : > { %s2319_s15 = sshll.u32 %s3899_s11, 7 }
 0x2bb   : > { %p2322_p9 = scmp.eq.s32.totalorder %s2319_s15, 0 }
 0x2bc   : > { %2608 = sdivrem.u32 (!%p2322_p9), %s3899_s11, 7 }
 0x2bd   : > { %1973 = sbr.rel (%p2322_p9) target bundleno = 758 (0x2f6), region = 64 }
 0x2c5   : > { %s3733_s18 = spop.drf %2608 }
 0x2c6   : > { %p2323_p10 = scmp.le.s32.totalorder %s3733_s18, 0 }
 0x2c7   : > { %s3892_s8 = smov (!%p2323_p10), %s3727_s13  ;;  %s3893_s25 = smov (!%p2323_p10), %s3704_s28 }
 0x2c8   : > { %2159 = sbr.rel (%p2323_p10) target bundleno = 729 (0x2d9), region = 146  ;;  %s3742_s16 = smov (!%p2323_p10), 0  }
 0x2c9   : > { %s3744_s19 = smov (!%p2323_p10), 0  }
 0x2cf LB: >> { %v2049_v34 = vld [vmem:[%s2674_s25] sm:$0xff]  ;;  %v2051_v33 = vld [vmem:[%s2674_s25 + $0x8] sm:$0xff]  ;;  %v2053_v29 = vld [vmem:[%s2674_s25 + $0x10] sm:$0xff]  ;;  %s2063_s20 = sadd.s32 1, %s2678_s16  ;;  %s2043_s19 = sadd.s32 1, %s2682_s19   ;;  %s2682_s19 = sphi %s3744_s19, %s2043_s19   ;;  %s2678_s16 = sphi %s3742_s16, %s3894_s16   ;;  %s2674_s25 = sphi %s3893_s25, %s2068_s25   ;;  %s2670_s8 = sphi %s3892_s8, %s2069_s8  }
 0x2d0   : >> { %2050 = vst [vmem:[%s2670_s8] sm:$0xff] %v2049_v34  ;;  %2052 = vst [vmem:[%s2670_s8 + $0x8] sm:$0xff] %v2051_v33  ;;  %v2055_v40 = vld [vmem:[%s2674_s25 + $0x18] sm:$0xff]  ;;  %v2057_v60 = vld [vmem:[%s2674_s25 + $0x20] sm:$0xff]  ;;  %p2064_p11 = scmp.ge.s32.totalorder %s2063_s20, %s3733_s18  ;;  %p2042_p12 = scmp.ge.s32.totalorder %s2043_s19, %s3733_s18 }
 0x2d1   : >> { %2054 = vst [vmem:[%s2670_s8 + $0x10] sm:$0xff] %v2053_v29  ;;  %v2059_v44 = vld [vmem:[%s2674_s25 + $0x28] sm:$0xff]  ;;  %2056 = vst [vmem:[%s2670_s8 + $0x18] sm:$0xff] %v2055_v40  ;;  %v2061_v12 = vld [vmem:[%s2674_s25 + $0x30] sm:$0xff] }
 0x2d2   : >> { %2058 = vst [vmem:[%s2670_s8 + $0x20] sm:$0xff] %v2057_v60  ;;  %2060 = vst [vmem:[%s2670_s8 + $0x28] sm:$0xff] %v2059_v44  ;;  %s3901_s20 = smov (%p2064_p11, %s2063_s20), 0  ;;  %2045 = sbr.rel (!%p2042_p12) target bundleno = 719 (0x2cf), region = 152 }
 0x2d3   : >> { %2062 = vst [vmem:[%s2670_s8 + $0x30] sm:$0xff] %v2061_v12  ;;  %s2066_s21 = smul.u32 56, %s3901_s20  ;;  %s3894_s16 = smov %s3901_s20 }
 0x2d5   : >> { %s2068_s25 = scalar_lea.vmem %s3704_s28, %s2066_s21 [#allocation3]   ;;  %s2069_s8 = scalar_lea.vmem %s3727_s13, %s2066_s21  }
 0x2d9 PF: > { %2610 = sdivrem.u32 %s3899_s11, 7 }
 0x2da   : > { %s2324_s23 = smul.u32 56, %s3733_s18 }
 0x2dc   : > { %s2074_s24 = scalar_lea.vmem %s3704_s28, %s2324_s23 [#allocation3]   ;;  %s2076_s26 = scalar_lea.vmem %s3727_s13, %s2324_s23  }
 0x2e2   : > { %s2611_s27 = spop.drf %2610 }
 0x2e3   : > { %p2326_p13 = scmp.le.s32.totalorder %s2611_s27, 0 }
 0x2e4   : > { %s2684_s22 = smov (!%p2326_p13), %s2076_s26   ;;  %s2688_s29 = smov (!%p2326_p13), %s2074_s24  }
 0x2e5   : > { %2173 = sbr.rel (%p2326_p13) target bundleno = 758 (0x2f6), region = 157  ;;  %s2692_s30 = smov (!%p2326_p13), 0  }
 0x2e6   : > { %s2696_s10 = smov (!%p2326_p13), 0  }
 0x2ec LB: >> { %v2086_v0 = vld [vmem:[%s2690_s29] sm:$0xff]  ;;  %s2088_s15 = sadd.s32 1, %s2694_s30  ;;  %s2080_s10 = sadd.s32 1, %s2698_s10   ;;  %s2698_s10 = sphi %s2696_s10, %s2080_s10   ;;  %s2694_s30 = sphi %s2692_s30, %s2693_s30   ;;  %s2690_s29 = sphi %s2688_s29, %s2093_s29   ;;  %s2686_s22 = sphi %s2684_s22, %s2094_s22  }
 0x2ed   : >> { %2087 = vst [vmem:[%s2686_s22] sm:$0xff] %v2086_v0  ;;  %p2089_p0 = scmp.ge.s32.totalorder %s2088_s15, %s2611_s27  ;;  %p2079_p1 = scmp.ge.s32.totalorder %s2080_s10, %s2611_s27 }
 0x2ef   : >> { %s3903_s15 = smov (%p2089_p0, %s2088_s15), 0  ;;  %2082 = sbr.rel (!%p2079_p1) target bundleno = 748 (0x2ec), region = 163 }
 0x2f0   : >> { %s2327_s28 = sshll.u32 %s3903_s15, 3  ;;  %s2693_s30 = smov %s3903_s15  }
 0x2f1   : >> { %s2093_s29 = scalar_lea.vmem %s2074_s24, %s2327_s28 [#allocation3]   ;;  %s2094_s22 = scalar_lea.vmem %s2076_s26, %s2327_s28  }
 0x2f6 PF: > { %p17_p2 = scmp.ge.s32.totalorder %s2772_s14, 4   ;;  %s3895_s11 = smov %s2662_s12 }
 0x2f7   : > { %s3896_s12 = smov %s2780_s17  ;;  %s3897_s13 = smov %s2772_s14 }
 0x2f8   :  { %19 = sbr.rel (!%p17_p2) target bundleno = 4 (0x4), region = 174 }

</bundles_post_ra>
